<compile_context>
chip_gen: v6e
topology: v6e:2x2x1
jax: 0.10.0
libtpu: 0.0.40
codegen_flags: <defaults>
</compile_context>

<pallas_src>
import functools
import math

import numpy as np
import jax
import jax.numpy as jnp
from jax.experimental import pallas as pl
from jax.experimental.pallas import tpu as pltpu


def _round_up(x, m):
    return (x + m - 1) // m * m


# --------------------------------------------------------------------------- #
# Kernel
# --------------------------------------------------------------------------- #
def _attention_block_kernel(
    x_ref, wqkv_ref, bqkv_ref, wo_ref, w1_ref, b1_ref, w2_ref, vecs_ref, o_ref,
    *, num_heads, head_dim_p, batch_block, seq_len, d_model, eps=1e-6,
):
    nh, hdp, Bt, L, D = num_heads, head_dim_p, batch_block, seq_len, d_model
    R = Bt * L
    scale = 1.0 / math.sqrt(D // nh)      # scale uses the TRUE head_dim
    inv_d = 1.0 / D                       # LN statistics over the TRUE d_model

    # Packed (Dp,)-sized parameter vectors (rows of an (8, Dp) array).
    ob   = vecs_ref[0:1, :]   # out_proj bias
    ln1g = vecs_ref[1:2, :]
    ln1b = vecs_ref[2:3, :]
    fb2  = vecs_ref[3:4, :]   # FFN second-linear bias
    ln2g = vecs_ref[4:5, :]
    ln2b = vecs_ref[5:6, :]

    x = x_ref[...]                                   # (R, Dp) f32, padding lanes are 0
    x_bf = x.astype(jnp.bfloat16)                    # single slab-wide cast

    # --- QKV projection: one big matmul, head-major / 128-aligned columns ---
    qkv = jnp.dot(x_bf, wqkv_ref[...], preferred_element_type=jnp.float32)
    qkv = qkv + bqkv_ref[...]                        # (R, nh*3*hdp) f32
    qkv_bf = qkv.astype(jnp.bfloat16)                # single slab-wide cast

    # --- Attention: per-head static loop (small nh); each slice is 128-aligned.
    # Score / PV matmuls are batched over the Bt batch block via 3-D einsums.
    heads = []
    for h in range(nh):
        base = h * 3 * hdp
        qh = qkv_bf[:, base           : base +     hdp].reshape(Bt, L, hdp)
        kh = qkv_bf[:, base +     hdp : base + 2 * hdp].reshape(Bt, L, hdp)
        vh = qkv_bf[:, base + 2 * hdp : base + 3 * hdp].reshape(Bt, L, hdp)
        # q @ k^T; padded lanes are zero so they contribute nothing.
        s = jnp.einsum("bqd,bkd->bqk", qh, kh,
                       preferred_element_type=jnp.float32) * scale       # (Bt,L,L) f32
        s = s - jnp.max(s, axis=-1, keepdims=True)
        p = jnp.exp(s)
        p = p * pl.reciprocal(jnp.sum(p, axis=-1, keepdims=True), approx=True)
        pv = jnp.einsum("bqk,bkd->bqd", p.astype(jnp.bfloat16), vh,
                        preferred_element_type=jnp.float32)              # (Bt,L,hdp)
        heads.append(pv.reshape(R, hdp).astype(jnp.bfloat16))

    # "concat(heads)" at 128-aligned lane offsets, then ONE out-projection over
    # the whole slab (K = nh*hdp) instead of nh small K=head_dim matmuls.
    heads_cat = jnp.concatenate(heads, axis=-1) if nh > 1 else heads[0]  # (R, nh*hdp)
    attn = jnp.dot(heads_cat, wo_ref[...],
                   preferred_element_type=jnp.float32) + ob              # (R, Dp) f32

    def layernorm(y, gamma, beta):
        # Padding lanes of y are exactly 0, so sum/ D and E[y^2]-mu^2 give the
        # statistics over the true d_model; gamma/beta padding is 0 so padded
        # output lanes stay 0.
        mu = jnp.sum(y, axis=-1, keepdims=True) * inv_d
        var = jnp.sum(y * y, axis=-1, keepdims=True) * inv_d - mu * mu
        return (y - mu) * jax.lax.rsqrt(var + eps) * gamma + beta

    # --- Residual + LayerNorm 1 ---
    out1 = layernorm(x + attn, ln1g, ln1b)

    # --- Feed-forward: Linear -> ReLU -> Linear (bf16 matmuls, f32 accumulate) ---
    h1 = jnp.dot(out1.astype(jnp.bfloat16), w1_ref[...],
                 preferred_element_type=jnp.float32) + b1_ref[...]
    h1 = jnp.maximum(h1, 0.0)
    ff = jnp.dot(h1.astype(jnp.bfloat16), w2_ref[...],
                 preferred_element_type=jnp.float32) + fb2

    # --- Residual + LayerNorm 2 ---
    out2 = layernorm(out1 + ff, ln2g, ln2b)
    o_ref[...] = out2.astype(o_ref.dtype)


# --------------------------------------------------------------------------- #
# Host-side packing / wrapper
# --------------------------------------------------------------------------- #
def prepare_params(p, num_heads):
    """One-time host packing: transpose weights into MXU-native (K, N) layout,
    reorder QKV columns head-major with every per-head q/k/v group padded to a
    128-lane boundary (padding is zero so the math is unchanged), pad d_model /
    hidden_dim to multiples of 128, cast matmul weights to bf16 and pack the
    six (D,)-sized vectors into one (8, Dp) f32 array."""
    D = p["out_proj_w"].shape[0]
    H = p["ff_w1"].shape[0]
    assert D % num_heads == 0
    hd = D // num_heads
    Dp, Hp, hdp = _round_up(D, 128), _round_up(H, 128), _round_up(hd, 128)

    inw = np.asarray(p["in_proj_w"], np.float32)          # (3D, D) rows = [Wq; Wk; Wv]
    inb = np.asarray(p["in_proj_b"], np.float32)          # (3D,)
    wqkv = np.zeros((Dp, num_heads * 3 * hdp), np.float32)
    bqkv = np.zeros((1, num_heads * 3 * hdp), np.float32)
    for h in range(num_heads):
        for j in range(3):                                 # 0 = q, 1 = k, 2 = v
            rows = slice(j * D + h * hd, j * D + (h + 1) * hd)
            col0 = h * 3 * hdp + j * hdp
            wqkv[:D, col0:col0 + hd] = inw[rows, :].T
            bqkv[0, col0:col0 + hd] = inb[rows]

    wo_t = np.asarray(p["out_proj_w"], np.float32).T       # (D, D): rows = concat-head dims
    wo = np.zeros((num_heads * hdp, Dp), np.float32)
    for h in range(num_heads):
        wo[h * hdp:h * hdp + hd, :D] = wo_t[h * hd:(h + 1) * hd, :]

    w1 = np.zeros((Dp, Hp), np.float32); w1[:D, :H] = np.asarray(p["ff_w1"], np.float32).T
    b1 = np.zeros((1, Hp), np.float32);  b1[0, :H] = np.asarray(p["ff_b1"], np.float32)
    w2 = np.zeros((Hp, Dp), np.float32); w2[:H, :D] = np.asarray(p["ff_w2"], np.float32).T

    vecs = np.zeros((8, Dp), np.float32)
    vecs[0, :D] = np.asarray(p["out_proj_b"], np.float32)
    vecs[1, :D] = np.asarray(p["ln1_g"], np.float32)
    vecs[2, :D] = np.asarray(p["ln1_b"], np.float32)
    vecs[3, :D] = np.asarray(p["ff_b2"], np.float32)
    vecs[4, :D] = np.asarray(p["ln2_g"], np.float32)
    vecs[5, :D] = np.asarray(p["ln2_b"], np.float32)

    return {
        "wqkv": jnp.asarray(wqkv, jnp.bfloat16),   # (Dp, nh*3*hdp)
        "bqkv": jnp.asarray(bqkv, jnp.float32),    # (1, nh*3*hdp)
        "wo":   jnp.asarray(wo, jnp.bfloat16),     # (nh*hdp, Dp)
        "w1":   jnp.asarray(w1, jnp.bfloat16),     # (Dp, Hp)
        "b1":   jnp.asarray(b1, jnp.float32),      # (1, Hp)
        "w2":   jnp.asarray(w2, jnp.bfloat16),     # (Hp, Dp)
        "vecs": jnp.asarray(vecs, jnp.float32),    # (8, Dp)
        "dims": (D, H, hd, Dp, Hp, hdp),
    }


def _pick_block_b(B, L, nh, hdp, Dp, Hp, max_bytes=8 << 20):
    """Batch elements per grid step: largest divisor of B whose f32 working set
    fits the budget, whose row block respects the (8,128) tiling, preferring
    >= 2 grid steps so both v7x TensorCores get work."""
    per_b = 4 * L * (4 * nh * hdp + L + Hp + 4 * Dp)
    cap = max(1, max_bytes // max(per_b, 1))
    legal = [c for c in range(1, B + 1)
             if B % c == 0 and ((c * L) % 8 == 0 or c == B)]
    fit = [c for c in legal if c <= cap]
    pool = fit if fit else [min(legal)]
    multi = [c for c in pool if B // c >= 2]
    return max(multi) if multi else max(pool)


def _vmem_limit_bytes():
    """Per-generation VMEM budget: ~75% of physical (v5e/v6e -> ~96 MiB,
    v7x -> ~48 MiB), with a conservative fallback if the query is unavailable."""
    try:
        cap = int(pltpu.get_tpu_info().vmem_capacity_bytes)
    except Exception:
        cap = 64 * 1024 * 1024
    return int(cap * 3 // 4)


def self_attention_block(x, prepared, *, num_heads):
    """x: (B, L, D) float32. prepared: output of prepare_params()."""
    B, L, D = x.shape
    D0, H, hd, Dp, Hp, hdp = prepared["dims"]
    assert D == D0 and D % num_heads == 0

    Bt = _pick_block_b(B, L, num_heads, hdp, Dp, Hp)
    R = Bt * L

    # Lane-dense input/output: pad d_model to a multiple of 128 (zeros) and work
    # on a flattened (B*L, Dp) slab so every block's last dim is >= 128.
    if Dp != D:
        x = jnp.pad(x, ((0, 0), (0, 0), (0, Dp - D)))
    x2d = x.reshape(B * L, Dp)

    kernel = functools.partial(
        _attention_block_kernel, num_heads=num_heads, head_dim_p=hdp,
        batch_block=Bt, seq_len=L, d_model=D)

    full2d = lambda shape: pl.BlockSpec(shape, lambda b: (0, 0))

    flops = 2 * B * L * (
        Dp * 3 * num_heads * hdp        # QKV projection
        + 2 * num_heads * L * hdp       # scores + PV
        + num_heads * hdp * Dp          # out projection
        + 2 * Dp * Hp)                  # FFN
    transcendentals = B * num_heads * L * L + 2 * B * L
    bytes_accessed = (
        4 * 2 * B * L * Dp
        + 2 * (prepared["wqkv"].size + prepared["wo"].size
               + prepared["w1"].size + prepared["w2"].size)
        + 4 * (prepared["bqkv"].size + prepared["b1"].size + prepared["vecs"].size))

    out2d = pl.pallas_call(
        kernel,
        out_shape=jax.ShapeDtypeStruct((B * L, Dp), jnp.float32),
        grid_spec=pltpu.PrefetchScalarGridSpec(
            num_scalar_prefetch=0,
            grid=(B // Bt,),
            in_specs=[
                pl.BlockSpec((R, Dp), lambda b: (b, 0)),        # x rows for this batch block
                full2d((Dp, num_heads * 3 * hdp)),              # QKV weight (head-major, bf16)
                full2d((1, num_heads * 3 * hdp)),               # QKV bias
                full2d((num_heads * hdp, Dp)),                  # out-proj weight (bf16)
                full2d((Dp, Hp)),                               # FFN W1 (bf16)
                full2d((1, Hp)),                                # FFN b1
                full2d((Hp, Dp)),                               # FFN W2 (bf16)
                full2d((8, Dp)),                                # packed bias/gamma/beta vectors
            ],
            out_specs=pl.BlockSpec((R, Dp), lambda b: (b, 0)),
        ),
        compiler_params=pltpu.CompilerParams(
            dimension_semantics=("parallel",),
            vmem_limit_bytes=_vmem_limit_bytes(),
        ),
        cost_estimate=pl.CostEstimate(
            flops=int(flops),
            transcendentals=int(transcendentals),
            bytes_accessed=int(bytes_accessed)),
    )(x2d, prepared["wqkv"], prepared["bqkv"], prepared["wo"],
      prepared["w1"], prepared["b1"], prepared["w2"], prepared["vecs"])

    out = out2d.reshape(B, L, Dp)
    return out[..., :D] if Dp != D else out


# --------------------------------------------------------------------------- #
# Parameters (PyTorch layout) + pure-JAX reference
# --------------------------------------------------------------------------- #
def init_params(key, d_model, num_heads, hidden_dim):
    """Params in PyTorch layout (as nn.MultiheadAttention / nn.Linear store them)."""
    ks = jax.random.split(key, 6)
    s = 0.05
    return {
        "in_proj_w": s * jax.random.normal(ks[0], (3 * d_model, d_model), jnp.float32),
        "in_proj_b": s * jax.random.normal(ks[1], (3 * d_model,), jnp.float32),
        "out_proj_w": s * jax.random.normal(ks[2], (d_model, d_model), jnp.float32),
        "out_proj_b": jnp.zeros((d_model,), jnp.float32),
        "ln1_g": jnp.ones((d_model,), jnp.float32),
        "ln1_b": jnp.zeros((d_model,), jnp.float32),
        "ff_w1": s * jax.random.normal(ks[3], (hidden_dim, d_model), jnp.float32),
        "ff_b1": s * jax.random.normal(ks[4], (hidden_dim,), jnp.float32),
        "ff_w2": s * jax.random.normal(ks[5], (d_model, hidden_dim), jnp.float32),
        "ff_b2": jnp.zeros((d_model,), jnp.float32),
        "ln2_g": jnp.ones((d_model,), jnp.float32),
        "ln2_b": jnp.zeros((d_model,), jnp.float32),
    }


def _reference(x, p, num_heads, eps=1e-6):
    """Pure-JAX f32 reference mirroring PyTorch semantics (eval mode, no dropout)."""
    B, L, D = x.shape
    hd = D // num_heads
    qkv = jnp.einsum("bld,ed->ble", x, p["in_proj_w"]) + p["in_proj_b"]
    q, k, v = qkv[..., :D], qkv[..., D:2 * D], qkv[..., 2 * D:]
    q = q.reshape(B, L, num_heads, hd).transpose(0, 2, 1, 3)
    k = k.reshape(B, L, num_heads, hd).transpose(0, 2, 1, 3)
    v = v.reshape(B, L, num_heads, hd).transpose(0, 2, 1, 3)
    s = jnp.einsum("bhqd,bhkd->bhqk", q, k) / math.sqrt(hd)
    a = jax.nn.softmax(s, axis=-1)
    o = jnp.einsum("bhqk,bhkd->bhqd", a, v).transpose(0, 2, 1, 3).reshape(B, L, D)
    attn_out = jnp.einsum("bld,ed->ble", o, p["out_proj_w"]) + p["out_proj_b"]

    def ln(y, g, b):
        mu = jnp.mean(y, -1, keepdims=True)
        var = jnp.mean((y - mu) ** 2, -1, keepdims=True)
        return (y - mu) / jnp.sqrt(var + eps) * g + b

    out1 = ln(x + attn_out, p["ln1_g"], p["ln1_b"])
    h1 = jax.nn.relu(jnp.einsum("bld,hd->blh", out1, p["ff_w1"]) + p["ff_b1"])
    ff = jnp.einsum("blh,dh->bld", h1, p["ff_w2"]) + p["ff_b2"]
    return ln(out1 + ff, p["ln2_g"], p["ln2_b"])


if __name__ == "__main__":
    B, L, d_model, num_heads, hidden_dim = 2, 8, 32, 4, 64

    key = jax.random.PRNGKey(0)
    kx, kp = jax.random.split(key)
    x = jax.random.normal(kx, (B, L, d_model), jnp.float32)
    params = init_params(kp, d_model, num_heads, hidden_dim)
    prepared = prepare_params(params, num_heads)

    out = self_attention_block(x, prepared, num_heads=num_heads)
    out = jax.block_until_ready(out)

    ref = _reference(x, params, num_heads)
    assert out.shape == (B, L, d_model)
    # bf16 matmul operands (f32 accumulation) + approx softmax reciprocal
    # => tolerance looser than a pure f32 run.
    assert jnp.allclose(out, ref, atol=2e-2, rtol=2e-2), "mismatch vs reference"

    print("KERNEL_OK")
</pallas_src>

<mosaic_0001>
module attributes {stable_mosaic.version = 11 : i64} {
  func.func @_attention_block_kernel(%arg0: i32, %arg1: memref<8x128xf32, #tpu.memory_space<vmem>>, %arg2: memref<128x1536xbf16, #tpu.memory_space<vmem>>, %arg3: memref<1x1536xf32, #tpu.memory_space<vmem>>, %arg4: memref<512x128xbf16, #tpu.memory_space<vmem>>, %arg5: memref<128x128xbf16, #tpu.memory_space<vmem>>, %arg6: memref<1x128xf32, #tpu.memory_space<vmem>>, %arg7: memref<128x128xbf16, #tpu.memory_space<vmem>>, %arg8: memref<8x128xf32, #tpu.memory_space<vmem>>, %arg9: memref<8x128xf32, #tpu.memory_space<vmem>>) attributes {dimension_semantics = [#tpu.dimension_semantics<parallel>], iteration_bounds = array<i64: 2>, scalar_prefetch = 0 : i64, scratch_operands = 0 : i64, tpu.core_type = #tpu.core_type<tc>, window_params = [{transform_indices = @transform_0, window_bounds = array<i64: 8, 128>}, {pipeline_mode = #tpu.pipeline_mode<synchronous>, transform_indices = @transform_1, window_bounds = array<i64: 128, 1536>}, {pipeline_mode = #tpu.pipeline_mode<synchronous>, transform_indices = @transform_2, window_bounds = array<i64: 1, 1536>}, {pipeline_mode = #tpu.pipeline_mode<synchronous>, transform_indices = @transform_3, window_bounds = array<i64: 512, 128>}, {pipeline_mode = #tpu.pipeline_mode<synchronous>, transform_indices = @transform_4, window_bounds = array<i64: 128, 128>}, {pipeline_mode = #tpu.pipeline_mode<synchronous>, transform_indices = @transform_5, window_bounds = array<i64: 1, 128>}, {pipeline_mode = #tpu.pipeline_mode<synchronous>, transform_indices = @transform_6, window_bounds = array<i64: 128, 128>}, {pipeline_mode = #tpu.pipeline_mode<synchronous>, transform_indices = @transform_7, window_bounds = array<i64: 8, 128>}, {transform_indices = @transform_8, window_bounds = array<i64: 8, 128>}]} {
    %c0 = arith.constant 0 : index
    %c0_0 = arith.constant 0 : index
    %0 = vector.load %arg8[%c0, %c0_0] : memref<8x128xf32, #tpu.memory_space<vmem>>, vector<1x128xf32>
    %c1 = arith.constant 1 : index
    %c0_1 = arith.constant 0 : index
    %1 = vector.load %arg8[%c1, %c0_1] : memref<8x128xf32, #tpu.memory_space<vmem>>, vector<1x128xf32>
    %c2 = arith.constant 2 : index
    %c0_2 = arith.constant 0 : index
    %2 = vector.load %arg8[%c2, %c0_2] : memref<8x128xf32, #tpu.memory_space<vmem>>, vector<1x128xf32>
    %c3 = arith.constant 3 : index
    %c0_3 = arith.constant 0 : index
    %3 = vector.load %arg8[%c3, %c0_3] : memref<8x128xf32, #tpu.memory_space<vmem>>, vector<1x128xf32>
    %c4 = arith.constant 4 : index
    %c0_4 = arith.constant 0 : index
    %4 = vector.load %arg8[%c4, %c0_4] : memref<8x128xf32, #tpu.memory_space<vmem>>, vector<1x128xf32>
    %c5 = arith.constant 5 : index
    %c0_5 = arith.constant 0 : index
    %5 = vector.load %arg8[%c5, %c0_5] : memref<8x128xf32, #tpu.memory_space<vmem>>, vector<1x128xf32>
    %c0_6 = arith.constant 0 : index
    %c0_7 = arith.constant 0 : index
    %6 = vector.load %arg1[%c0_6, %c0_7] : memref<8x128xf32, #tpu.memory_space<vmem>>, vector<8x128xf32>
    %7 = arith.truncf %6 : vector<8x128xf32> to vector<8x128xbf16>
    %c0_8 = arith.constant 0 : index
    %c0_9 = arith.constant 0 : index
    %8 = vector.load %arg2[%c0_8, %c0_9] : memref<128x1536xbf16, #tpu.memory_space<vmem>>, vector<128x1536xbf16>
    %cst = arith.constant dense<0.000000e+00> : vector<8x1536xf32>
    %9 = tpu.matmul %7, %8, %cst {dimension_numbers = #tpu.dot_dimension_numbers<[1], [0], [0], [1], [0, 0, 1, 1], [], []>} : vector<8x128xbf16>, vector<128x1536xbf16>, vector<8x1536xf32> -> vector<8x1536xf32>
    %c0_10 = arith.constant 0 : index
    %c0_11 = arith.constant 0 : index
    %10 = vector.load %arg3[%c0_10, %c0_11] : memref<1x1536xf32, #tpu.memory_space<vmem>>, vector<1x1536xf32>
    %11 = vector.broadcast %10 : vector<1x1536xf32> to vector<8x1536xf32>
    %12 = arith.addf %9, %11 : vector<8x1536xf32>
    %13 = arith.truncf %12 : vector<8x1536xf32> to vector<8x1536xbf16>
    %14 = vector.extract_strided_slice %13 {offsets = [0, 0], sizes = [8, 128], strides = [1, 1]} : vector<8x1536xbf16> to vector<8x128xbf16>
    %15 = vector.shape_cast %14 : vector<8x128xbf16> to vector<1x8x128xbf16>
    %16 = vector.extract_strided_slice %13 {offsets = [0, 128], sizes = [8, 128], strides = [1, 1]} : vector<8x1536xbf16> to vector<8x128xbf16>
    %17 = vector.shape_cast %16 : vector<8x128xbf16> to vector<1x8x128xbf16>
    %18 = vector.extract_strided_slice %13 {offsets = [0, 256], sizes = [8, 128], strides = [1, 1]} : vector<8x1536xbf16> to vector<8x128xbf16>
    %19 = vector.shape_cast %18 : vector<8x128xbf16> to vector<1x8x128xbf16>
    "tpu.trace_start"() <{level = 10 : i32, message = "bqd,bkd->bqk"}> : () -> ()
    %cst_12 = arith.constant dense<0.000000e+00> : vector<1x8x8xf32>
    %20 = tpu.matmul %15, %17, %cst_12 {dimension_numbers = #tpu.dot_dimension_numbers<[2], [2], [1], [1], [0, 0, 0, 1, 1, 1], [0], [0]>} : vector<1x8x128xbf16>, vector<1x8x128xbf16>, vector<1x8x8xf32> -> vector<1x8x8xf32>
    "tpu.trace_stop"() : () -> ()
    %cst_13 = arith.constant 0.353553385 : f32
    %21 = vector.broadcast %cst_13 : f32 to vector<1x8x8xf32>
    %22 = arith.mulf %20, %21 : vector<1x8x8xf32>
    %cst_14 = arith.constant dense<0xFF800000> : vector<1x8xf32>
    %23 = vector.multi_reduction <maximumf>, %22, %cst_14 [2] : vector<1x8x8xf32> to vector<1x8xf32>
    %24 = vector.shape_cast %23 : vector<1x8xf32> to vector<1x8x1xf32>
    %25 = vector.broadcast %24 : vector<1x8x1xf32> to vector<1x8x8xf32>
    %26 = arith.subf %22, %25 : vector<1x8x8xf32>
    %27 = math.exp %26 : vector<1x8x8xf32>
    %cst_15 = arith.constant dense<0.000000e+00> : vector<1x8xf32>
    %28 = vector.multi_reduction <add>, %27, %cst_15 [2] : vector<1x8x8xf32> to vector<1x8xf32>
    %29 = vector.shape_cast %28 : vector<1x8xf32> to vector<1x8x1xf32>
    %30 = tpu.reciprocal %29 {approx = true} : vector<1x8x1xf32> -> vector<1x8x1xf32>
    %31 = vector.broadcast %30 : vector<1x8x1xf32> to vector<1x8x8xf32>
    %32 = arith.mulf %27, %31 : vector<1x8x8xf32>
    %33 = arith.truncf %32 : vector<1x8x8xf32> to vector<1x8x8xbf16>
    "tpu.trace_start"() <{level = 10 : i32, message = "bqk,bkd->bqd"}> : () -> ()
    %cst_16 = arith.constant dense<0.000000e+00> : vector<1x8x128xf32>
    %34 = tpu.matmul %33, %19, %cst_16 {dimension_numbers = #tpu.dot_dimension_numbers<[2], [1], [1], [2], [0, 0, 0, 1, 1, 2], [0], [0]>} : vector<1x8x8xbf16>, vector<1x8x128xbf16>, vector<1x8x128xf32> -> vector<1x8x128xf32>
    "tpu.trace_stop"() : () -> ()
    %35 = vector.shape_cast %34 : vector<1x8x128xf32> to vector<8x128xf32>
    %36 = arith.truncf %35 : vector<8x128xf32> to vector<8x128xbf16>
    %37 = vector.extract_strided_slice %13 {offsets = [0, 384], sizes = [8, 128], strides = [1, 1]} : vector<8x1536xbf16> to vector<8x128xbf16>
    %38 = vector.shape_cast %37 : vector<8x128xbf16> to vector<1x8x128xbf16>
    %39 = vector.extract_strided_slice %13 {offsets = [0, 512], sizes = [8, 128], strides = [1, 1]} : vector<8x1536xbf16> to vector<8x128xbf16>
    %40 = vector.shape_cast %39 : vector<8x128xbf16> to vector<1x8x128xbf16>
    %41 = vector.extract_strided_slice %13 {offsets = [0, 640], sizes = [8, 128], strides = [1, 1]} : vector<8x1536xbf16> to vector<8x128xbf16>
    %42 = vector.shape_cast %41 : vector<8x128xbf16> to vector<1x8x128xbf16>
    "tpu.trace_start"() <{level = 10 : i32, message = "bqd,bkd->bqk"}> : () -> ()
    %cst_17 = arith.constant dense<0.000000e+00> : vector<1x8x8xf32>
    %43 = tpu.matmul %38, %40, %cst_17 {dimension_numbers = #tpu.dot_dimension_numbers<[2], [2], [1], [1], [0, 0, 0, 1, 1, 1], [0], [0]>} : vector<1x8x128xbf16>, vector<1x8x128xbf16>, vector<1x8x8xf32> -> vector<1x8x8xf32>
    "tpu.trace_stop"() : () -> ()
    %cst_18 = arith.constant 0.353553385 : f32
    %44 = vector.broadcast %cst_18 : f32 to vector<1x8x8xf32>
    %45 = arith.mulf %43, %44 : vector<1x8x8xf32>
    %cst_19 = arith.constant dense<0xFF800000> : vector<1x8xf32>
    %46 = vector.multi_reduction <maximumf>, %45, %cst_19 [2] : vector<1x8x8xf32> to vector<1x8xf32>
    %47 = vector.shape_cast %46 : vector<1x8xf32> to vector<1x8x1xf32>
    %48 = vector.broadcast %47 : vector<1x8x1xf32> to vector<1x8x8xf32>
    %49 = arith.subf %45, %48 : vector<1x8x8xf32>
    %50 = math.exp %49 : vector<1x8x8xf32>
    %cst_20 = arith.constant dense<0.000000e+00> : vector<1x8xf32>
    %51 = vector.multi_reduction <add>, %50, %cst_20 [2] : vector<1x8x8xf32> to vector<1x8xf32>
    %52 = vector.shape_cast %51 : vector<1x8xf32> to vector<1x8x1xf32>
    %53 = tpu.reciprocal %52 {approx = true} : vector<1x8x1xf32> -> vector<1x8x1xf32>
    %54 = vector.broadcast %53 : vector<1x8x1xf32> to vector<1x8x8xf32>
    %55 = arith.mulf %50, %54 : vector<1x8x8xf32>
    %56 = arith.truncf %55 : vector<1x8x8xf32> to vector<1x8x8xbf16>
    "tpu.trace_start"() <{level = 10 : i32, message = "bqk,bkd->bqd"}> : () -> ()
    %cst_21 = arith.constant dense<0.000000e+00> : vector<1x8x128xf32>
    %57 = tpu.matmul %56, %42, %cst_21 {dimension_numbers = #tpu.dot_dimension_numbers<[2], [1], [1], [2], [0, 0, 0, 1, 1, 2], [0], [0]>} : vector<1x8x8xbf16>, vector<1x8x128xbf16>, vector<1x8x128xf32> -> vector<1x8x128xf32>
    "tpu.trace_stop"() : () -> ()
    %58 = vector.shape_cast %57 : vector<1x8x128xf32> to vector<8x128xf32>
    %59 = arith.truncf %58 : vector<8x128xf32> to vector<8x128xbf16>
    %60 = vector.extract_strided_slice %13 {offsets = [0, 768], sizes = [8, 128], strides = [1, 1]} : vector<8x1536xbf16> to vector<8x128xbf16>
    %61 = vector.shape_cast %60 : vector<8x128xbf16> to vector<1x8x128xbf16>
    %62 = vector.extract_strided_slice %13 {offsets = [0, 896], sizes = [8, 128], strides = [1, 1]} : vector<8x1536xbf16> to vector<8x128xbf16>
    %63 = vector.shape_cast %62 : vector<8x128xbf16> to vector<1x8x128xbf16>
    %64 = vector.extract_strided_slice %13 {offsets = [0, 1024], sizes = [8, 128], strides = [1, 1]} : vector<8x1536xbf16> to vector<8x128xbf16>
    %65 = vector.shape_cast %64 : vector<8x128xbf16> to vector<1x8x128xbf16>
    "tpu.trace_start"() <{level = 10 : i32, message = "bqd,bkd->bqk"}> : () -> ()
    %cst_22 = arith.constant dense<0.000000e+00> : vector<1x8x8xf32>
    %66 = tpu.matmul %61, %63, %cst_22 {dimension_numbers = #tpu.dot_dimension_numbers<[2], [2], [1], [1], [0, 0, 0, 1, 1, 1], [0], [0]>} : vector<1x8x128xbf16>, vector<1x8x128xbf16>, vector<1x8x8xf32> -> vector<1x8x8xf32>
    "tpu.trace_stop"() : () -> ()
    %cst_23 = arith.constant 0.353553385 : f32
    %67 = vector.broadcast %cst_23 : f32 to vector<1x8x8xf32>
    %68 = arith.mulf %66, %67 : vector<1x8x8xf32>
    %cst_24 = arith.constant dense<0xFF800000> : vector<1x8xf32>
    %69 = vector.multi_reduction <maximumf>, %68, %cst_24 [2] : vector<1x8x8xf32> to vector<1x8xf32>
    %70 = vector.shape_cast %69 : vector<1x8xf32> to vector<1x8x1xf32>
    %71 = vector.broadcast %70 : vector<1x8x1xf32> to vector<1x8x8xf32>
    %72 = arith.subf %68, %71 : vector<1x8x8xf32>
    %73 = math.exp %72 : vector<1x8x8xf32>
    %cst_25 = arith.constant dense<0.000000e+00> : vector<1x8xf32>
    %74 = vector.multi_reduction <add>, %73, %cst_25 [2] : vector<1x8x8xf32> to vector<1x8xf32>
    %75 = vector.shape_cast %74 : vector<1x8xf32> to vector<1x8x1xf32>
    %76 = tpu.reciprocal %75 {approx = true} : vector<1x8x1xf32> -> vector<1x8x1xf32>
    %77 = vector.broadcast %76 : vector<1x8x1xf32> to vector<1x8x8xf32>
    %78 = arith.mulf %73, %77 : vector<1x8x8xf32>
    %79 = arith.truncf %78 : vector<1x8x8xf32> to vector<1x8x8xbf16>
    "tpu.trace_start"() <{level = 10 : i32, message = "bqk,bkd->bqd"}> : () -> ()
    %cst_26 = arith.constant dense<0.000000e+00> : vector<1x8x128xf32>
    %80 = tpu.matmul %79, %65, %cst_26 {dimension_numbers = #tpu.dot_dimension_numbers<[2], [1], [1], [2], [0, 0, 0, 1, 1, 2], [0], [0]>} : vector<1x8x8xbf16>, vector<1x8x128xbf16>, vector<1x8x128xf32> -> vector<1x8x128xf32>
    "tpu.trace_stop"() : () -> ()
    %81 = vector.shape_cast %80 : vector<1x8x128xf32> to vector<8x128xf32>
    %82 = arith.truncf %81 : vector<8x128xf32> to vector<8x128xbf16>
    %83 = vector.extract_strided_slice %13 {offsets = [0, 1152], sizes = [8, 128], strides = [1, 1]} : vector<8x1536xbf16> to vector<8x128xbf16>
    %84 = vector.shape_cast %83 : vector<8x128xbf16> to vector<1x8x128xbf16>
    %85 = vector.extract_strided_slice %13 {offsets = [0, 1280], sizes = [8, 128], strides = [1, 1]} : vector<8x1536xbf16> to vector<8x128xbf16>
    %86 = vector.shape_cast %85 : vector<8x128xbf16> to vector<1x8x128xbf16>
    %87 = vector.extract_strided_slice %13 {offsets = [0, 1408], sizes = [8, 128], strides = [1, 1]} : vector<8x1536xbf16> to vector<8x128xbf16>
    %88 = vector.shape_cast %87 : vector<8x128xbf16> to vector<1x8x128xbf16>
    "tpu.trace_start"() <{level = 10 : i32, message = "bqd,bkd->bqk"}> : () -> ()
    %cst_27 = arith.constant dense<0.000000e+00> : vector<1x8x8xf32>
    %89 = tpu.matmul %84, %86, %cst_27 {dimension_numbers = #tpu.dot_dimension_numbers<[2], [2], [1], [1], [0, 0, 0, 1, 1, 1], [0], [0]>} : vector<1x8x128xbf16>, vector<1x8x128xbf16>, vector<1x8x8xf32> -> vector<1x8x8xf32>
    "tpu.trace_stop"() : () -> ()
    %cst_28 = arith.constant 0.353553385 : f32
    %90 = vector.broadcast %cst_28 : f32 to vector<1x8x8xf32>
    %91 = arith.mulf %89, %90 : vector<1x8x8xf32>
    %cst_29 = arith.constant dense<0xFF800000> : vector<1x8xf32>
    %92 = vector.multi_reduction <maximumf>, %91, %cst_29 [2] : vector<1x8x8xf32> to vector<1x8xf32>
    %93 = vector.shape_cast %92 : vector<1x8xf32> to vector<1x8x1xf32>
    %94 = vector.broadcast %93 : vector<1x8x1xf32> to vector<1x8x8xf32>
    %95 = arith.subf %91, %94 : vector<1x8x8xf32>
    %96 = math.exp %95 : vector<1x8x8xf32>
    %cst_30 = arith.constant dense<0.000000e+00> : vector<1x8xf32>
    %97 = vector.multi_reduction <add>, %96, %cst_30 [2] : vector<1x8x8xf32> to vector<1x8xf32>
    %98 = vector.shape_cast %97 : vector<1x8xf32> to vector<1x8x1xf32>
    %99 = tpu.reciprocal %98 {approx = true} : vector<1x8x1xf32> -> vector<1x8x1xf32>
    %100 = vector.broadcast %99 : vector<1x8x1xf32> to vector<1x8x8xf32>
    %101 = arith.mulf %96, %100 : vector<1x8x8xf32>
    %102 = arith.truncf %101 : vector<1x8x8xf32> to vector<1x8x8xbf16>
    "tpu.trace_start"() <{level = 10 : i32, message = "bqk,bkd->bqd"}> : () -> ()
    %cst_31 = arith.constant dense<0.000000e+00> : vector<1x8x128xf32>
    %103 = tpu.matmul %102, %88, %cst_31 {dimension_numbers = #tpu.dot_dimension_numbers<[2], [1], [1], [2], [0, 0, 0, 1, 1, 2], [0], [0]>} : vector<1x8x8xbf16>, vector<1x8x128xbf16>, vector<1x8x128xf32> -> vector<1x8x128xf32>
    "tpu.trace_stop"() : () -> ()
    %104 = vector.shape_cast %103 : vector<1x8x128xf32> to vector<8x128xf32>
    %105 = arith.truncf %104 : vector<8x128xf32> to vector<8x128xbf16>
    %106 = tpu.concatenate %36, %59, %82, %105 in 1 : vector<8x128xbf16>, vector<8x128xbf16>, vector<8x128xbf16>, vector<8x128xbf16> -> vector<8x512xbf16>
    %c0_32 = arith.constant 0 : index
    %c0_33 = arith.constant 0 : index
    %107 = vector.load %arg4[%c0_32, %c0_33] : memref<512x128xbf16, #tpu.memory_space<vmem>>, vector<512x128xbf16>
    %cst_34 = arith.constant dense<0.000000e+00> : vector<8x128xf32>
    %108 = tpu.matmul %106, %107, %cst_34 {dimension_numbers = #tpu.dot_dimension_numbers<[1], [0], [0], [1], [0, 0, 1, 1], [], []>} : vector<8x512xbf16>, vector<512x128xbf16>, vector<8x128xf32> -> vector<8x128xf32>
    %109 = vector.broadcast %0 : vector<1x128xf32> to vector<8x128xf32>
    %110 = arith.addf %108, %109 : vector<8x128xf32>
    %111 = arith.addf %6, %110 : vector<8x128xf32>
    %cst_35 = arith.constant dense<0.000000e+00> : vector<8xf32>
    %112 = vector.multi_reduction <add>, %111, %cst_35 [1] : vector<8x128xf32> to vector<8xf32>
    %113 = vector.shape_cast %112 : vector<8xf32> to vector<8x1xf32>
    %cst_36 = arith.constant 3.125000e-02 : f32
    %114 = vector.broadcast %cst_36 : f32 to vector<8x1xf32>
    %115 = arith.mulf %113, %114 : vector<8x1xf32>
    %116 = arith.mulf %111, %111 : vector<8x128xf32>
    %cst_37 = arith.constant dense<0.000000e+00> : vector<8xf32>
    %117 = vector.multi_reduction <add>, %116, %cst_37 [1] : vector<8x128xf32> to vector<8xf32>
    %118 = vector.shape_cast %117 : vector<8xf32> to vector<8x1xf32>
    %cst_38 = arith.constant 3.125000e-02 : f32
    %119 = vector.broadcast %cst_38 : f32 to vector<8x1xf32>
    %120 = arith.mulf %118, %119 : vector<8x1xf32>
    %121 = arith.mulf %115, %115 : vector<8x1xf32>
    %122 = arith.subf %120, %121 : vector<8x1xf32>
    %123 = vector.broadcast %115 : vector<8x1xf32> to vector<8x128xf32>
    %124 = arith.subf %111, %123 : vector<8x128xf32>
    %cst_39 = arith.constant 9.99999997E-7 : f32
    %125 = vector.broadcast %cst_39 : f32 to vector<8x1xf32>
    %126 = arith.addf %122, %125 : vector<8x1xf32>
    %127 = math.rsqrt %126 : vector<8x1xf32>
    %128 = vector.broadcast %127 : vector<8x1xf32> to vector<8x128xf32>
    %129 = arith.mulf %124, %128 : vector<8x128xf32>
    %130 = vector.broadcast %1 : vector<1x128xf32> to vector<8x128xf32>
    %131 = arith.mulf %129, %130 : vector<8x128xf32>
    %132 = vector.broadcast %2 : vector<1x128xf32> to vector<8x128xf32>
    %133 = arith.addf %131, %132 : vector<8x128xf32>
    %134 = arith.truncf %133 : vector<8x128xf32> to vector<8x128xbf16>
    %c0_40 = arith.constant 0 : index
    %c0_41 = arith.constant 0 : index
    %135 = vector.load %arg5[%c0_40, %c0_41] : memref<128x128xbf16, #tpu.memory_space<vmem>>, vector<128x128xbf16>
    %cst_42 = arith.constant dense<0.000000e+00> : vector<8x128xf32>
    %136 = tpu.matmul %134, %135, %cst_42 {dimension_numbers = #tpu.dot_dimension_numbers<[1], [0], [0], [1], [0, 0, 1, 1], [], []>} : vector<8x128xbf16>, vector<128x128xbf16>, vector<8x128xf32> -> vector<8x128xf32>
    %c0_43 = arith.constant 0 : index
    %c0_44 = arith.constant 0 : index
    %137 = vector.load %arg6[%c0_43, %c0_44] : memref<1x128xf32, #tpu.memory_space<vmem>>, vector<1x128xf32>
    %138 = vector.broadcast %137 : vector<1x128xf32> to vector<8x128xf32>
    %139 = arith.addf %136, %138 : vector<8x128xf32>
    %cst_45 = arith.constant 0.000000e+00 : f32
    %140 = vector.broadcast %cst_45 : f32 to vector<8x128xf32>
    %141 = arith.maximumf %139, %140 : vector<8x128xf32>
    %142 = arith.truncf %141 : vector<8x128xf32> to vector<8x128xbf16>
    %c0_46 = arith.constant 0 : index
    %c0_47 = arith.constant 0 : index
    %143 = vector.load %arg7[%c0_46, %c0_47] : memref<128x128xbf16, #tpu.memory_space<vmem>>, vector<128x128xbf16>
    %cst_48 = arith.constant dense<0.000000e+00> : vector<8x128xf32>
    %144 = tpu.matmul %142, %143, %cst_48 {dimension_numbers = #tpu.dot_dimension_numbers<[1], [0], [0], [1], [0, 0, 1, 1], [], []>} : vector<8x128xbf16>, vector<128x128xbf16>, vector<8x128xf32> -> vector<8x128xf32>
    %145 = vector.broadcast %3 : vector<1x128xf32> to vector<8x128xf32>
    %146 = arith.addf %144, %145 : vector<8x128xf32>
    %147 = arith.addf %133, %146 : vector<8x128xf32>
    %cst_49 = arith.constant dense<0.000000e+00> : vector<8xf32>
    %148 = vector.multi_reduction <add>, %147, %cst_49 [1] : vector<8x128xf32> to vector<8xf32>
    %149 = vector.shape_cast %148 : vector<8xf32> to vector<8x1xf32>
    %cst_50 = arith.constant 3.125000e-02 : f32
    %150 = vector.broadcast %cst_50 : f32 to vector<8x1xf32>
    %151 = arith.mulf %149, %150 : vector<8x1xf32>
    %152 = arith.mulf %147, %147 : vector<8x128xf32>
    %cst_51 = arith.constant dense<0.000000e+00> : vector<8xf32>
    %153 = vector.multi_reduction <add>, %152, %cst_51 [1] : vector<8x128xf32> to vector<8xf32>
    %154 = vector.shape_cast %153 : vector<8xf32> to vector<8x1xf32>
    %cst_52 = arith.constant 3.125000e-02 : f32
    %155 = vector.broadcast %cst_52 : f32 to vector<8x1xf32>
    %156 = arith.mulf %154, %155 : vector<8x1xf32>
    %157 = arith.mulf %151, %151 : vector<8x1xf32>
    %158 = arith.subf %156, %157 : vector<8x1xf32>
    %159 = vector.broadcast %151 : vector<8x1xf32> to vector<8x128xf32>
    %160 = arith.subf %147, %159 : vector<8x128xf32>
    %cst_53 = arith.constant 9.99999997E-7 : f32
    %161 = vector.broadcast %cst_53 : f32 to vector<8x1xf32>
    %162 = arith.addf %158, %161 : vector<8x1xf32>
    %163 = math.rsqrt %162 : vector<8x1xf32>
    %164 = vector.broadcast %163 : vector<8x1xf32> to vector<8x128xf32>
    %165 = arith.mulf %160, %164 : vector<8x128xf32>
    %166 = vector.broadcast %4 : vector<1x128xf32> to vector<8x128xf32>
    %167 = arith.mulf %165, %166 : vector<8x128xf32>
    %168 = vector.broadcast %5 : vector<1x128xf32> to vector<8x128xf32>
    %169 = arith.addf %167, %168 : vector<8x128xf32>
    %c0_54 = arith.constant 0 : index
    %c0_55 = arith.constant 0 : index
    %170 = vector.load %arg9[%c0_54, %c0_55] : memref<8x128xf32, #tpu.memory_space<vmem>>, vector<8x128xf32>
    tpu.vector_store %arg9[%c0_54, %c0_55], %169 {strides = array<i32>} : memref<8x128xf32, #tpu.memory_space<vmem>>, vector<8x128xf32>,
    return
  }
  func.func @transform_0(%arg0: i32) -> (i32, i32) {
    %c0_i32 = arith.constant 0 : i32
    %c0_i32_0 = arith.constant 0 : i32
    return %arg0, %c0_i32 : i32, i32
  }
  func.func @transform_1(%arg0: i32) -> (i32, i32) {
    %c0_i32 = arith.constant 0 : i32
    %c0_i32_0 = arith.constant 0 : i32
    %c0_i32_1 = arith.constant 0 : i32
    return %c0_i32, %c0_i32_0 : i32, i32
  }
  func.func @transform_2(%arg0: i32) -> (i32, i32) {
    %c0_i32 = arith.constant 0 : i32
    %c0_i32_0 = arith.constant 0 : i32
    %c0_i32_1 = arith.constant 0 : i32
    return %c0_i32, %c0_i32_0 : i32, i32
  }
  func.func @transform_3(%arg0: i32) -> (i32, i32) {
    %c0_i32 = arith.constant 0 : i32
    %c0_i32_0 = arith.constant 0 : i32
    %c0_i32_1 = arith.constant 0 : i32
    return %c0_i32, %c0_i32_0 : i32, i32
  }
  func.func @transform_4(%arg0: i32) -> (i32, i32) {
    %c0_i32 = arith.constant 0 : i32
    %c0_i32_0 = arith.constant 0 : i32
    %c0_i32_1 = arith.constant 0 : i32
    return %c0_i32, %c0_i32_0 : i32, i32
  }
  func.func @transform_5(%arg0: i32) -> (i32, i32) {
    %c0_i32 = arith.constant 0 : i32
    %c0_i32_0 = arith.constant 0 : i32
    %c0_i32_1 = arith.constant 0 : i32
    return %c0_i32, %c0_i32_0 : i32, i32
  }
  func.func @transform_6(%arg0: i32) -> (i32, i32) {
    %c0_i32 = arith.constant 0 : i32
    %c0_i32_0 = arith.constant 0 : i32
    %c0_i32_1 = arith.constant 0 : i32
    return %c0_i32, %c0_i32_0 : i32, i32
  }
  func.func @transform_7(%arg0: i32) -> (i32, i32) {
    %c0_i32 = arith.constant 0 : i32
    %c0_i32_0 = arith.constant 0 : i32
    %c0_i32_1 = arith.constant 0 : i32
    return %c0_i32, %c0_i32_0 : i32, i32
  }
  func.func @transform_8(%arg0: i32) -> (i32, i32) {
    %c0_i32 = arith.constant 0 : i32
    %c0_i32_0 = arith.constant 0 : i32
    return %arg0, %c0_i32 : i32, i32
  }
}

</mosaic_0001>

<bundles_post_ra>
// kernel: tpu_custom_call.1
= control target key start
LH: loop header
LB: loop body
LE: loop exit
PB: predicated region body
PF: predicated region fallthrough
CT: control target
= control target key end

     0   :  { %s3759_s0 = inlined_call_operand.hbm [shape: f32[16,128], index: 0, kind: input, shape index: {}]   ;;  %s3760_s1 = inlined_call_operand.hbm [shape: bf16[128,1536], index: 1, kind: input, shape index: {}]   ;;  %s3761_s2 = inlined_call_operand.hbm [shape: f32[1,1536], index: 2, kind: input, shape index: {}]   ;;  %s3762_s3 = inlined_call_operand.hbm [shape: bf16[512,128], index: 3, kind: input, shape index: {}]   ;;  %s3763_s4 = inlined_call_operand.hbm [shape: bf16[128,128], index: 4, kind: input, shape index: {}]   ;;  %s3764_s5 = inlined_call_operand.vmem [shape: f32[1,128], index: 5, kind: input, shape index: {}]   ;;  %s3765_s6 = inlined_call_operand.hbm [shape: bf16[128,128], index: 6, kind: input, shape index: {}]   ;;  %s3766_s7 = inlined_call_operand.vmem [shape: f32[8,128], index: 7, kind: input, shape index: {}]   ;;  %s3767_s8 = inlined_call_operand.hbm [shape: f32[16,128], index: 8, kind: output, shape index: {}]  }
   0x1   :  { %3772 = sst [smem:[#allocation19_spill]] %s3760_s1 }
   0x2   :  { %3773 = sst [smem:[#allocation20_spill]] %s3761_s2 }
   0x3   :  { %3774 = sst [smem:[#allocation21_spill]] %s3762_s3 }
   0x4   :  { %13 = vsyncpa [#allocation3], 0 }
   0x5   :  { %15 = vsyncpa [#allocation3 + $0x1], 0 }
   0x6   :  { %16 = vsyncpa [#allocation6], 0 }
   0x7   :  { %17 = vsyncpa [#allocation9], 0 }
   0x8   :  { %18 = vsyncpa [#allocation12], 0 }
   0x9   :  { %19 = vsyncpa [#allocation4], 0 }
   0xa   :  { %21 = vsyncpa [#allocation4 + $0x1], 0  ;;  %s3399_s27 = smov 0   ;;  %s3401_s28 = smov 0  }
   0xb   :  { %s3403_s29 = smov 0   ;;  %s3405_s30 = smov 0  }
   0xc LB: > { %s3340_s9 = smov [#allocation5]   ;;  %s3420_s11 = sadd.s32 4294967295, %s3338_s30   ;;  %s3338_s30 = sphi %s3405_s30, %s3799_s30   ;;  %s3334_s29 = sphi %s3403_s29, %s3798_s29   ;;  %s3330_s28 = sphi %s3401_s28, %s3797_s28   ;;  %s3326_s27 = sphi %s3399_s27, %s3796_s27  }
   0xd   : > { %s243_s10 = sshll.u32 %s3340_s9, 4  ;;  %p2445_p0 = scmp.ge.s32.totalorder %s3338_s30, 1  ;;  %s244_s10 = int_to_ptr.vmem [resolvable:$true] %s243_s10 }
   0xe   : > { %p3768_p1 = scmp.eq.s32.totalorder %s3420_s11, 0  ;;  %p231_p2 = scmp.lt.s32.totalorder %s3338_s30, 3 }
   0xf   : > { %s3341_s13 = smov [#allocation8]   ;;  %s3342_s16 = smov [#allocation7]  }
  0x10   : > { %p3425_p3 = pnand %p2445_p0, %p231_p2  ;;  %s267_s14 = sshll.u32 %s3341_s13, 4  ;;  %s3438_s14 = int_to_ptr.vmem [resolvable:$true] %s267_s14 }
  0x11   : > { %s3440_s17 = sshll.u32 %s3342_s16, 4  ;;  %s3115_s19 = scalar_lea.vmem %s244_s10, 12288  ;;  %s258_s17 = int_to_ptr.vmem [resolvable:$true] %s3440_s17 }
  0x12   : > { %s3775_s12 = scalar_select %p3425_p3, 1, 0 }
  0x13   : > { %p2811_p5 = pneg %p3425_p3  ;;  %p3116_p8 = scmp.ne.s32.totalorder %s244_s10, %s3115_s19 }
  0x14   : > { %p3123_p11 = scmp.lt.s32.totalorder %s244_s10, %s244_s10  ;;  %p3124_p12 = scmp.lt.s32.totalorder %s3115_s19, %s3115_s19 }
  0x15   : > { %p3434_p6 = pnand %p2811_p5, %p3768_p1 }
  0x16   : > { %p3125_p13 = por %p3124_p12, %p3123_p11 }
  0x17   : > { %p3444_p7 = pneg %p3434_p6 }
  0x19   : > { %p3118_p9 = pnand %p3116_p8, %p3444_p7 }
  0x1b   : > { %p3119_p10 = pneg %p3118_p9 }
  0x1d   : > { %p3126_p0 = pnand %p3125_p13, %p3119_p10 }
  0x1f   : > { %3129 = shalt.err (!%p3126_p0)
}
  0x20   : > { %s3343_s20 = smov 768   ;;  %s3344_s21 = smov 48  }
  0x21   : > { %s3778_s1 = sld [smem:[#allocation19_spill]]  ;;  %s3141_s24 = scalar_lea.vmem %s3438_s14, 4096 }
  0x22   : > { %p3142_p2 = scmp.ne.s32.totalorder %s3438_s14, %s3141_s24  ;;  %p3149_p9 = scmp.lt.s32.totalorder %s3438_s14, %s3438_s14 }
  0x23   : > { %p3150_p10 = scmp.lt.s32.totalorder %s3141_s24, %s3141_s24 }
  0x24   : > { %p3144_p5 = pnand %p3142_p2, %p3444_p7 }
  0x25   : > { %p3151_p11 = por %p3150_p10, %p3149_p9 }
  0x26   : > { %p3145_p8 = pneg %p3144_p5 }
  0x27   : > { %2814 = dma.hbm_to_vmem [thread:$0]  (!%p3434_p6), %s3778_s1, 12288, %s244_s10, [#allocation6], %s3343_s20, %s3343_s20, %s3344_s21  }
  0x28   : > { %p3152_p12 = pnand %p3151_p11, %p3145_p8 }
  0x2a   : > { %3155 = shalt.err (!%p3152_p12)
}
  0x2b   : > { %s3345_s25 = smov 64   ;;  %s3346_s26 = smov 4  }
  0x2c   : > { %s3779_s3 = sld [smem:[#allocation21_spill]]  ;;  %s3167_s13 = scalar_lea.vmem %s258_s17, 192 }
  0x2d   : > { %p3168_p13 = scmp.ne.s32.totalorder %s258_s17, %s3167_s13  ;;  %p3175_p5 = scmp.lt.s32.totalorder %s258_s17, %s258_s17 }
  0x2e   : > { %p3176_p8 = scmp.lt.s32.totalorder %s3167_s13, %s3167_s13 }
  0x2f   : > { %p3170_p0 = pnand %p3168_p13, %p3444_p7 }
  0x30   : > { %p3177_p9 = por %p3176_p8, %p3175_p5 }
  0x31   : > { %p3171_p2 = pneg %p3170_p0 }
  0x32   : > { %2820 = dma.hbm_to_vmem [thread:$0]  (!%p3434_p6), %s3779_s3, 4096, %s3438_s14, [#allocation9], %s3345_s25, %s3345_s25, %s3346_s26  }
  0x33   : > { %p3178_p10 = pnand %p3177_p9, %p3171_p2 }
  0x35   : > { %3181 = shalt.err (!%p3178_p10)
}
  0x36   : > { %s3780_s2 = sld [smem:[#allocation20_spill]]  ;;  %s3347_s20 = smov [#allocation10]  }
  0x37   : > { %s280_s14 = sshll.u32 %s3347_s20, 4  ;;  %s3348_s21 = smov [#allocation11]   ;;  %s281_s14 = int_to_ptr.vmem [resolvable:$true] %s280_s14 }
  0x38   : > { %s296_s22 = sshll.u32 %s3348_s21, 4  ;;  %s3193_s23 = scalar_lea.vmem %s281_s14, 1024  ;;  %s297_s22 = int_to_ptr.vmem [resolvable:$true] %s296_s22 }
  0x39   : > { %p3194_p11 = scmp.ne.s32.totalorder %s281_s14, %s3193_s23  ;;  %p3201_p0 = scmp.lt.s32.totalorder %s281_s14, %s281_s14 }
  0x3a   : > { %p3202_p2 = scmp.lt.s32.totalorder %s3193_s23, %s3193_s23 }
  0x3b   : > { %p3196_p12 = pnand %p3194_p11, %p3444_p7 }
  0x3c   : > { %2817 = dma.hbm_to_vmem [thread:$0]  (!%p3434_p6), %s3780_s2, 192, %s258_s17, [#allocation6]  }
  0x3d   : > { %p3197_p13 = pneg %p3196_p12  ;;  %p3203_p5 = por %p3202_p2, %p3201_p0 }
  0x3f   : > { %p3204_p8 = pnand %p3203_p5, %p3197_p13 }
  0x41   : > { %3207 = shalt.err (!%p3204_p8)
}
  0x42   : > { %2823 = dma.hbm_to_vmem [thread:$0]  (!%p3434_p6), %s3763_s4, 1024, %s281_s14, [#allocation9], %s3345_s25, %s3345_s25, %s3346_s26  }
  0x43   : > { %s3219_s9 = scalar_lea.vmem %s297_s22, 1024  ;;  %p3227_p12 = scmp.lt.s32.totalorder %s297_s22, %s297_s22 }
  0x44   : > { %p3220_p9 = scmp.ne.s32.totalorder %s297_s22, %s3219_s9  ;;  %p3228_p0 = scmp.lt.s32.totalorder %s3219_s9, %s3219_s9 }
  0x46   : > { %p3222_p10 = pnand %p3220_p9, %p3444_p7  ;;  %p3229_p13 = por %p3228_p0, %p3227_p12 }
  0x48   : > { %p3223_p11 = pneg %p3222_p10 }
  0x4a   : > { %p3230_p2 = pnand %p3229_p13, %p3223_p11 }
  0x4c   : > { %3233 = shalt.err (!%p3230_p2)
}
  0x4d   : > { %2826 = dma.hbm_to_vmem [thread:$0]  (!%p3434_p6), %s3765_s6, 1024, %s297_s22, [#allocation12], %s3345_s25, %s3345_s25, %s3346_s26  }
  0x4e   : > { %s2444_s15 = sadd.s32 4294967294, %s3338_s30   ;;  %s3500_s18 = sadd.s32 1, %s3338_s30  }
  0x4f   : > { %s34_s16 = sadd.s32 1, %s3334_s29  ;;  %s31_s19 = ssub.s32 %s3338_s30, %s3500_s18 }
  0x50   : > { %p41_p7 = scmp.ne.s32.totalorder %s3334_s29, %s3330_s28  ;;  %p32_p5 = scmp.eq.s32.totalorder %s31_s19, 0 }
  0x51   : > { %p42_p8 = scmp.eq.s32.totalorder %s3338_s30, 0  ;;  %p47_p9 = scmp.ne.s32.totalorder %s3330_s28, %s3326_s27 }
  0x52   : > { %p218_p10 = scmp.eq.s32.totalorder %s3420_s11, 1  ;;  %p224_p0 = scmp.eq.s32.totalorder %s2444_s15, 1 }
  0x53   : > { %s3512_s20 = scalar_select %p32_p5, %s3334_s29, %s34_s16  }
  0x54   : > { %p43_p11 = por %p42_p8, %p41_p7  ;;  %p3516_p12 = por %p3768_p1, %p47_p9 }
  0x55   : > { %p3520_p6 = por %p218_p10, %p41_p7  ;;  %p2840_p13 = scmp.lt.s32.totalorder %s3338_s30, 2 }
  0x56   : > { %s3781_s14 = scalar_select %p3516_p12, 1, 0 }
  0x57   : > { %s3782_s25 = scalar_select %p3520_p6, 1, 0 }
  0x58   : > { %s313_s26 = sand.u32 1, %s3334_s29   ;;  %p3526_p2 = por %p224_p0, %p47_p9 }
  0x59   : > { %s2452_s22 = sshll.u32 %s313_s26, 3  ;;  %s2453_s23 = sshll.u32 %s3338_s30, 7 }
  0x5a   : > { %s3783_s21 = scalar_select %p3526_p2, 1, 0 }
  0x5b   : > { %s3534_s9 = scalar_lea.hbm %s3759_s0, %s2453_s23  ;;  %s317_s10 = scalar_lea.vmem [#allocation2], %s2452_s22 }
  0x5c   : > { %s324_s13 = sshll.u32 %s317_s10, 4  ;;  %p3536_p7 = pnand %p2840_p13, %p43_p11  ;;  %s325_s13 = int_to_ptr.vmem [resolvable:$true] %s324_s13 }
  0x5d   : > { %s314_s16 = scalar_lea.sflag [#allocation3], %s313_s26  ;;  %s3234_s19 = scalar_lea.hbm %s3534_s9, 128 }
  0x5e   : > { %p3235_p5 = scmp.ne.s32.totalorder %s3534_s9, %s3234_s19  ;;  %p3236_p8 = pneg %p3536_p7 }
  0x5f   : > { %s3239_s24 = scalar_lea.hbm %s3759_s0, 256  ;;  %p3240_p11 = scmp.lt.s32.totalorder %s3534_s9, %s3759_s0 }
  0x60   : > { %p3237_p9 = pnand %p3236_p8, %p3235_p5  ;;  %p3241_p0 = scmp.lt.s32.totalorder %s3239_s24, %s3234_s19 }
  0x62   : > { %p3238_p10 = pneg %p3237_p9  ;;  %p3242_p13 = por %p3241_p0, %p3240_p11 }
  0x64   : > { %p3243_p4 = pnand %p3242_p13, %p3238_p10 }
  0x66   : > { %3246 = shalt.err (!%p3243_p4)
}
  0x67   : > { %s3247_s10 = scalar_lea.vmem %s325_s13, 128  ;;  %s3349_s26 = smov [#allocation2]  }
  0x68   : > { %p3248_p1 = scmp.ne.s32.totalorder %s325_s13, %s3247_s10  ;;  %s3252_s2 = sshll.u32 %s3349_s26, 4  ;;  %s3253_s2 = int_to_ptr.vmem [resolvable:$false] %s3252_s2 }
  0x69   : > { %s3254_s3 = scalar_lea.vmem %s3253_s2, 256  ;;  %p3255_p5 = scmp.lt.s32.totalorder %s325_s13, %s3253_s2 }
  0x6a   : > { %p3250_p2 = pnand %p3248_p1, %p3236_p8  ;;  %p3256_p9 = scmp.lt.s32.totalorder %s3254_s3, %s3247_s10 }
  0x6c   : > { %p3251_p6 = pneg %p3250_p2  ;;  %p3257_p12 = por %p3256_p9, %p3255_p5 }
  0x6e   : > { %p3258_p3 = pnand %p3257_p12, %p3251_p6 }
  0x70   : > { %3261 = shalt.err (!%p3258_p3)
}
  0x71   : > { %2830 = dma.hbm_to_vmem [thread:$0]  (!%p3536_p7), %s3534_s9, 128, %s325_s13, %s314_s16  }
  0x72   : > { %p3785_p10 = scmp.ne.s32.totalorder %s3775_s12, 0 }
  0x73   : > { %s3557_s1 = sand.u32 (!%p3785_p10), 1, %s3330_s28   ;;  %p3786_p1 = scmp.ne.s32.totalorder (!%p3785_p10), %s3781_s14, 0 }
  0x74   : > { %333 = sbr.rel (%p3785_p10) target bundleno = 2082 (0x822), region = 52  ;;  %s2455_s19 = sshll.u32 (!%p3785_p10), %s3557_s1, 3 }
  0x75   : > { %s336_s2 = scalar_lea.sflag (!%p3785_p10), [#allocation3], %s3557_s1  ;;  %s3563_s3 = scalar_lea.vmem (!%p3785_p10), [#allocation2], %s2455_s19 }
  0x79   : > { %3305 = dma.done.wait (%p3786_p1), %s336_s2, 128  }
  0x7a   : > { %3307 = vsyncadd (%p3786_p1), %s336_s2, 4294967168  ;;  %p3787_p3 = scmp.eq.s32.totalorder %s3420_s11, 0 }
  0x7c   : > { %3309 = dma.done.wait (%p3787_p3), [#allocation6], 12480   ;;  %p3788_p4 = pmov %p3787_p3 }
  0x7d   : > { %p3789_p12 = pmov %p3787_p3 }
  0x7e   : > { %3311 = vsyncadd (%p3788_p4), [#allocation6], 4294954816 }
  0x7f   : > { %3313 = dma.done.wait (%p3789_p12), [#allocation9], 5120   ;;  %p3790_p6 = pmov %p3787_p3 }
  0x80   : > { %p3791_p2 = pmov %p3787_p3 }
  0x81   : > { %3315 = vsyncadd (%p3790_p6), [#allocation9], 4294962176 }
  0x82   : > { %3317 = dma.done.wait (%p3791_p2), [#allocation12], 1024   ;;  %p3792_p7 = pmov %p3791_p2 }
  0x83   : > { %v3350_v0 = vmov 0   ;;  %v2891_v1 = vld [vmem:[#allocation5 + $0x2a4] ss:$48 sps:$4 sm:$0xff]   ;;  %v2893_v2 = vld [vmem:[#allocation5 + $0x2ac] ss:$48 sps:$4 sm:$0xff]   ;;  %vm3352_vm0 = vmmov 0  }
  0x84   : > { %3319 = vsyncadd (%p3792_p7), [#allocation12], 4294966272  ;;  %1073 = vmatprep.mubr.bf16.mxu0 %v3350_v0  ;;  %1114 = vmatprep.mubr.bf16.mxu1 %v3350_v0  ;;  %v2895_v3 = vld [vmem:[#allocation5 + $0x2a0] ss:$48 sps:$4 sm:$0xff]   ;;  %v2896_v4 = vld [vmem:[#allocation5 + $0x2a8] ss:$48 sps:$4 sm:$0xff]  }
  0x85   : > { %1041 = vmatprep.subr.bf16.mxu0 %v2891_v1  ;;  %1082 = vmatprep.subr.bf16.mxu1 %v2893_v2  ;;  %v2897_v5 = vld [vmem:[#allocation5 + $0x244] ss:$48 sps:$4 sm:$0xff]   ;;  %v2899_v6 = vld [vmem:[#allocation5 + $0x24c] ss:$48 sps:$4 sm:$0xff]   ;;  %v2901_v7 = vld [vmem:[#allocation5 + $0x240] ss:$48 sps:$4 sm:$0xff]  }
  0x86   : > { %1042 = vmatpush1.bf16.msra.mxu0 %v2895_v3  ;;  %1083 = vmatpush1.bf16.msra.mxu1 %v2896_v4  ;;  %v2902_v8 = vld [vmem:[#allocation5 + $0x248] ss:$48 sps:$4 sm:$0xff]   ;;  %v2903_v9 = vld [vmem:[#allocation5 + $0x1e4] ss:$48 sps:$4 sm:$0xff]   ;;  %v2905_v10 = vld [vmem:[#allocation5 + $0x1ec] ss:$48 sps:$4 sm:$0xff]  }
  0x87   : > { %1043 = vmatprep.subr.bf16.mxu0 %v2897_v5  ;;  %1084 = vmatprep.subr.bf16.mxu1 %v2899_v6  ;;  %v2907_v11 = vld [vmem:[#allocation5 + $0x1e0] ss:$48 sps:$4 sm:$0xff]   ;;  %v2908_v12 = vld [vmem:[#allocation5 + $0x1e8] ss:$48 sps:$4 sm:$0xff]   ;;  %v2909_v13 = vld [vmem:[#allocation5 + $0x184] ss:$48 sps:$4 sm:$0xff]  }
  0x88   : > { %v2911_v14 = vld [vmem:[#allocation5 + $0x18c] ss:$48 sps:$4 sm:$0xff]   ;;  %v2913_v15 = vld [vmem:[#allocation5 + $0x180] ss:$48 sps:$4 sm:$0xff]   ;;  %v2914_v16 = vld [vmem:[#allocation5 + $0x188] ss:$48 sps:$4 sm:$0xff]  }
  0x89   : > { %v2915_v17 = vld [vmem:[#allocation5 + $0x124] ss:$48 sps:$4 sm:$0xff]   ;;  %v2917_v18 = vld [vmem:[#allocation5 + $0x12c] ss:$48 sps:$4 sm:$0xff]   ;;  %v2919_v19 = vld [vmem:[#allocation5 + $0x120] ss:$48 sps:$4 sm:$0xff]  }
  0x8a   : > { %1044 = vmatpush1.bf16.msra.mxu0 %v2901_v7  ;;  %1085 = vmatpush1.bf16.msra.mxu1 %v2902_v8  ;;  %v2920_v20 = vld [vmem:[#allocation5 + $0x128] ss:$48 sps:$4 sm:$0xff]   ;;  %v2921_v21 = vld [vmem:[#allocation5 + $0xc4] ss:$48 sps:$4 sm:$0xff]   ;;  %v2923_v22 = vld [vmem:[#allocation5 + $0xcc] ss:$48 sps:$4 sm:$0xff]  }
  0x8b   : > { %1045 = vmatprep.subr.bf16.mxu0 %v2903_v9  ;;  %1086 = vmatprep.subr.bf16.mxu1 %v2905_v10  ;;  %v2925_v23 = vld [vmem:[#allocation5 + $0xc0] ss:$48 sps:$4 sm:$0xff]   ;;  %v2926_v24 = vld [vmem:[#allocation5 + $0xc8] ss:$48 sps:$4 sm:$0xff]   ;;  %v2927_v25 = vld [vmem:[#allocation5 + $0x64] ss:$48 sps:$4 sm:$0xff]  }
  0x8c   : > { %v2929_v26 = vld [vmem:[#allocation5 + $0x6c] ss:$48 sps:$4 sm:$0xff]   ;;  %v2931_v27 = vld [vmem:[#allocation5 + $0x60] ss:$48 sps:$4 sm:$0xff]   ;;  %v2932_v28 = vld [vmem:[#allocation5 + $0x68] ss:$48 sps:$4 sm:$0xff]  }
  0x8d   : > { %v2933_v29 = vld [vmem:[#allocation5 + $0x4] ss:$48 sps:$4 sm:$0xff]   ;;  %v2935_v30 = vld [vmem:[#allocation5 + $0xc] ss:$48 sps:$4 sm:$0xff]   ;;  %v2937_v31 = vld [vmem:[#allocation5] ss:$48 sps:$4 sm:$0xff]  }
  0x8e   : > { %1046 = vmatpush1.bf16.msra.mxu0 %v2907_v11  ;;  %1087 = vmatpush1.bf16.msra.mxu1 %v2908_v12  ;;  %v2938_v32 = vld [vmem:[#allocation5 + $0x8] ss:$48 sps:$4 sm:$0xff]   ;;  %v2941_v34 = vld [vmem:[#allocation5 + $0x2b4] ss:$48 sps:$4 sm:$0xff]   ;;  %v2944_v35 = vld [vmem:[#allocation5 + $0x2bc] ss:$48 sps:$4 sm:$0xff]  }
  0x8f   : > { %1047 = vmatprep.subr.bf16.mxu0 %v2909_v13  ;;  %1088 = vmatprep.subr.bf16.mxu1 %v2911_v14  ;;  %v399_v33 = vld [vmem:[%s3563_s3] sm:$0xff]  ;;  %vm1356_vm1 = vcmask 1043456   ;;  %vm1340_vm2 = vcmask 64512   ;;  %s2618_s12 = sshll.u32 %s3420_s11, 7  ;;  %s391_s14 = scalar_lea.vmem [#allocation13], %s2455_s19 }
  0x90   : > { %v3584_v36 = vpack.c.bf16 %v399_v33, %v399_v33  ;;  %v2939_v37 = vld [vmem:[#allocation5 + $0x2b0] ss:$48 sps:$4 sm:$0xff]   ;;  %v2942_v38 = vld [vmem:[#allocation5 + $0x2b8] ss:$48 sps:$4 sm:$0xff]   ;;  %v2947_v39 = vld [vmem:[#allocation5 + $0x254] ss:$48 sps:$4 sm:$0xff]   ;;  %s2324_s16 = scalar_lea.hbm %s3767_s8, %s2618_s12 }
  0x91   : > { %v2950_v40 = vld [vmem:[#allocation5 + $0x25c] ss:$48 sps:$4 sm:$0xff]   ;;  %v2945_v41 = vld [vmem:[#allocation5 + $0x250] ss:$48 sps:$4 sm:$0xff]   ;;  %v2948_v42 = vld [vmem:[#allocation5 + $0x258] ss:$48 sps:$4 sm:$0xff]  }
  0x92   : > { %1048 = vmatpush1.bf16.msra.mxu0 %v2913_v15  ;;  %1089 = vmatpush1.bf16.msra.mxu1 %v2914_v16  ;;  %v2953_v43 = vld [vmem:[#allocation5 + $0x1f4] ss:$48 sps:$4 sm:$0xff]   ;;  %v2956_v44 = vld [vmem:[#allocation5 + $0x1fc] ss:$48 sps:$4 sm:$0xff]   ;;  %v2951_v45 = vld [vmem:[#allocation5 + $0x1f0] ss:$48 sps:$4 sm:$0xff]  }
  0x93   : > { %1049 = vmatprep.subr.bf16.mxu0 %v2915_v17  ;;  %1090 = vmatprep.subr.bf16.mxu1 %v2917_v18  ;;  %v2954_v46 = vld [vmem:[#allocation5 + $0x1f8] ss:$48 sps:$4 sm:$0xff]   ;;  %v2959_v47 = vld [vmem:[#allocation5 + $0x194] ss:$48 sps:$4 sm:$0xff]   ;;  %v2962_v48 = vld [vmem:[#allocation5 + $0x19c] ss:$48 sps:$4 sm:$0xff]  }
  0x94   : > { %v2957_v49 = vld [vmem:[#allocation5 + $0x190] ss:$48 sps:$4 sm:$0xff]   ;;  %v2960_v50 = vld [vmem:[#allocation5 + $0x198] ss:$48 sps:$4 sm:$0xff]   ;;  %v2965_v51 = vld [vmem:[#allocation5 + $0x134] ss:$48 sps:$4 sm:$0xff]  }
  0x95   : > { %v2968_v52 = vld [vmem:[#allocation5 + $0x13c] ss:$48 sps:$4 sm:$0xff]   ;;  %v2963_v53 = vld [vmem:[#allocation5 + $0x130] ss:$48 sps:$4 sm:$0xff]   ;;  %v2966_v54 = vld [vmem:[#allocation5 + $0x138] ss:$48 sps:$4 sm:$0xff]  }
  0x96   : > { %1050 = vmatpush1.bf16.msra.mxu0 %v2919_v19  ;;  %1091 = vmatpush1.bf16.msra.mxu1 %v2920_v20  ;;  %v2971_v55 = vld [vmem:[#allocation5 + $0xd4] ss:$48 sps:$4 sm:$0xff]   ;;  %v2974_v56 = vld [vmem:[#allocation5 + $0xdc] ss:$48 sps:$4 sm:$0xff]   ;;  %v2969_v57 = vld [vmem:[#allocation5 + $0xd0] ss:$48 sps:$4 sm:$0xff]  }
  0x97   : > { %1051 = vmatprep.subr.bf16.mxu0 %v2921_v21  ;;  %1092 = vmatprep.subr.bf16.mxu1 %v2923_v22  ;;  %v2972_v58 = vld [vmem:[#allocation5 + $0xd8] ss:$48 sps:$4 sm:$0xff]   ;;  %v2977_v59 = vld [vmem:[#allocation5 + $0x74] ss:$48 sps:$4 sm:$0xff]   ;;  %v2980_v60 = vld [vmem:[#allocation5 + $0x7c] ss:$48 sps:$4 sm:$0xff]  }
  0x98   : > { %v2975_v61 = vld [vmem:[#allocation5 + $0x70] ss:$48 sps:$4 sm:$0xff]   ;;  %v2978_v62 = vld [vmem:[#allocation5 + $0x78] ss:$48 sps:$4 sm:$0xff]   ;;  %v2983_v63 = vld [vmem:[#allocation5 + $0x14] ss:$48 sps:$4 sm:$0xff]  }
  0x99   : > { %v2986_v1 = vld [vmem:[#allocation5 + $0x1c] ss:$48 sps:$4 sm:$0xff]   ;;  %v2981_v2 = vld [vmem:[#allocation5 + $0x10] ss:$48 sps:$4 sm:$0xff]   ;;  %v2984_v3 = vld [vmem:[#allocation5 + $0x18] ss:$48 sps:$4 sm:$0xff]  }
  0x9a   : > { %1052 = vmatpush1.bf16.msra.mxu0 %v2925_v23  ;;  %1093 = vmatpush1.bf16.msra.mxu1 %v2926_v24  ;;  %v2989_v4 = vld [vmem:[#allocation5 + $0x2c4] ss:$48 sps:$4 sm:$0xff]   ;;  %v2992_v5 = vld [vmem:[#allocation5 + $0x2cc] ss:$48 sps:$4 sm:$0xff]   ;;  %v2987_v6 = vld [vmem:[#allocation5 + $0x2c0] ss:$48 sps:$4 sm:$0xff]  }
  0x9b   : > { %1053 = vmatprep.subr.bf16.mxu0 %v2927_v25  ;;  %1094 = vmatprep.subr.bf16.mxu1 %v2929_v26  ;;  %v2990_v7 = vld [vmem:[#allocation5 + $0x2c8] ss:$48 sps:$4 sm:$0xff]   ;;  %v2995_v8 = vld [vmem:[#allocation5 + $0x264] ss:$48 sps:$4 sm:$0xff]   ;;  %v2998_v9 = vld [vmem:[#allocation5 + $0x26c] ss:$48 sps:$4 sm:$0xff]  }
  0x9c   : > { %v2993_v10 = vld [vmem:[#allocation5 + $0x260] ss:$48 sps:$4 sm:$0xff]   ;;  %v2996_v11 = vld [vmem:[#allocation5 + $0x268] ss:$48 sps:$4 sm:$0xff]   ;;  %v3001_v12 = vld [vmem:[#allocation5 + $0x204] ss:$48 sps:$4 sm:$0xff]  }
  0x9d   : > { %v3004_v13 = vld [vmem:[#allocation5 + $0x20c] ss:$48 sps:$4 sm:$0xff]   ;;  %v2999_v14 = vld [vmem:[#allocation5 + $0x200] ss:$48 sps:$4 sm:$0xff]   ;;  %v3002_v15 = vld [vmem:[#allocation5 + $0x208] ss:$48 sps:$4 sm:$0xff]  }
  0x9e   : > { %1054 = vmatpush1.bf16.msra.mxu0 %v2931_v27  ;;  %1095 = vmatpush1.bf16.msra.mxu1 %v2932_v28  ;;  %v3007_v16 = vld [vmem:[#allocation5 + $0x1a4] ss:$48 sps:$4 sm:$0xff]   ;;  %v3010_v17 = vld [vmem:[#allocation5 + $0x1ac] ss:$48 sps:$4 sm:$0xff]   ;;  %v3005_v18 = vld [vmem:[#allocation5 + $0x1a0] ss:$48 sps:$4 sm:$0xff]  }
  0x9f   : > { %1055 = vmatprep.subr.bf16.mxu0 %v2933_v29  ;;  %1096 = vmatprep.subr.bf16.mxu1 %v2935_v30  ;;  %v3008_v19 = vld [vmem:[#allocation5 + $0x1a8] ss:$48 sps:$4 sm:$0xff]   ;;  %v3013_v20 = vld [vmem:[#allocation5 + $0x144] ss:$48 sps:$4 sm:$0xff]   ;;  %v3016_v21 = vld [vmem:[#allocation5 + $0x14c] ss:$48 sps:$4 sm:$0xff]  }
  0xa0   : > { %v3011_v22 = vld [vmem:[#allocation5 + $0x140] ss:$48 sps:$4 sm:$0xff]   ;;  %v3014_v23 = vld [vmem:[#allocation5 + $0x148] ss:$48 sps:$4 sm:$0xff]   ;;  %v3019_v24 = vld [vmem:[#allocation5 + $0xe4] ss:$48 sps:$4 sm:$0xff]  }
  0xa1   : > { %v3022_v25 = vld [vmem:[#allocation5 + $0xec] ss:$48 sps:$4 sm:$0xff]   ;;  %v3020_v26 = vld [vmem:[#allocation5 + $0xe8] ss:$48 sps:$4 sm:$0xff]   ;;  %v3025_v27 = vld [vmem:[#allocation5 + $0x84] ss:$48 sps:$4 sm:$0xff]  }
  0xa2   : > { %1056 = vmatpush1.bf16.msra.mxu0 %v2937_v31  ;;  %1097 = vmatpush1.bf16.msra.mxu1 %v2938_v32  ;;  %v3028_v28 = vld [vmem:[#allocation5 + $0x8c] ss:$48 sps:$4 sm:$0xff]   ;;  %v3023_v29 = vld [vmem:[#allocation5 + $0x80] ss:$48 sps:$4 sm:$0xff]   ;;  %v3026_v30 = vld [vmem:[#allocation5 + $0x88] ss:$48 sps:$4 sm:$0xff]  }
  0xa3   : > { %1123 = vmatprep.subr.bf16.mxu0 %v2941_v34  ;;  %1164 = vmatprep.subr.bf16.mxu1 %v2944_v35  ;;  %v3031_v31 = vld [vmem:[#allocation5 + $0x24] ss:$48 sps:$4 sm:$0xff]   ;;  %v3034_v32 = vld [vmem:[#allocation5 + $0x2c] ss:$48 sps:$4 sm:$0xff]   ;;  %v3029_v33 = vld [vmem:[#allocation5 + $0x20] ss:$48 sps:$4 sm:$0xff]  }
  0xa4   : > { %v3032_v34 = vld [vmem:[#allocation5 + $0x28] ss:$48 sps:$4 sm:$0xff]   ;;  %v3351_v35 = vmov 0.0   ;;  %s2326_s9 = sshll.u32 %s391_s14, 4  ;;  %s2313_s23 = scalar_lea.sflag [#allocation4], %s3557_s1  ;;  %s2327_s9 = int_to_ptr.vmem [resolvable:$true] %s2326_s9 }
  0xa5   : > { %1074 = vmatmul.mubr.bf16.vlgmr.msra.gmra.mxu0 %v3584_v36  ;;  %1115 = vmatmul.mubr.bf16.vlgmr.msra.gmra.mxu1 %v3584_v36  ;;  %s3262_s17 = scalar_lea.vmem %s2327_s9, 128  ;;  %p3793_p11 = scmp.ne.s32.totalorder %s3782_s25, 0 }
  0xa6   : > { %1124 = vmatpush1.bf16.msra.mxu0 %v2939_v37  ;;  %1165 = vmatpush1.bf16.msra.mxu1 %v2942_v38  ;;  %v501_v37 = vlaneseq  ;;  %p3263_p8 = scmp.ne.s32.totalorder %s2327_s9, %s3262_s17  ;;  %s3353_s24 = smov [#allocation13]  }
  0xa7   : > { %1125 = vmatprep.subr.bf16.mxu0 %v2947_v39  ;;  %1166 = vmatprep.subr.bf16.mxu1 %v2950_v40  ;;  %v3605_v40 = vld [vmem:[#allocation7 + $0x8] sm:$0xf]  ;;  %s3266_s22 = sshll.u32 %s3353_s24, 4  ;;  %s3267_s22 = int_to_ptr.vmem [resolvable:$false] %s3266_s22 }
  0xa8   : > { %1155 = vmatprep.mubr.bf16.mxu0 %v3350_v0  ;;  %1196 = vmatprep.mubr.bf16.mxu1 %v3350_v0  ;;  %v3602_v38 = vshrl.u32 %v501_v37, 7  ;;  %p3264_p0 = pnand %p3263_p8, %p3793_p11  ;;  %s3268_s11 = scalar_lea.vmem %s3267_s22, 256 }
  0xa9   : > { %p3269_p5 = scmp.lt.s32.totalorder %s2327_s9, %s3267_s22  ;;  %p3270_p9 = scmp.lt.s32.totalorder %s3268_s11, %s3262_s17 }
  0xaa   : > { %1126 = vmatpush1.bf16.msra.mxu0 %v2945_v41  ;;  %1167 = vmatpush1.bf16.msra.mxu1 %v2948_v42  ;;  %v515_v39 = vsub.s32 3, %v3602_v38  ;;  %v511_v41 = vsub.s32 2, %v3602_v38  ;;  %v3611_v42 = vld [vmem:[#allocation7] sm:$0xff]  ;;  %p3265_p13 = pneg %p3264_p0 }
  0xab   : > { %1127 = vmatprep.subr.bf16.mxu0 %v2953_v43  ;;  %1168 = vmatprep.subr.bf16.mxu1 %v2956_v44  ;;  %v507_v43 = vsub.s32 1, %v3602_v38  ;;  %p3271_p10 = por %p3270_p9, %p3269_p5 }
  0xac   : > { %v512_v44 = vrot.slane %v3611_v42, %v511_v41 }
  0xad   : > { %p3272_p1 = pnand %p3271_p10, %p3265_p13 }
  0xae   : > { %1128 = vmatpush1.bf16.msra.mxu0 %v2951_v45  ;;  %1169 = vmatpush1.bf16.msra.mxu1 %v2954_v46  ;;  %v508_v45 = vrot.slane %v3611_v42, %v507_v43  ;;  %v503_v46 = vsub.s32 0, %v3602_v38 }
  0xaf   : > { %1129 = vmatprep.subr.bf16.mxu0 %v2959_v47  ;;  %1170 = vmatprep.subr.bf16.mxu1 %v2962_v48 }
  0xb2   : > { %1130 = vmatpush1.bf16.msra.mxu0 %v2957_v49  ;;  %1171 = vmatpush1.bf16.msra.mxu1 %v2960_v50 }
  0xb3   : > { %1131 = vmatprep.subr.bf16.mxu0 %v2965_v51  ;;  %1172 = vmatprep.subr.bf16.mxu1 %v2968_v52 }
  0xb6   : > { %1132 = vmatpush1.bf16.msra.mxu0 %v2963_v53  ;;  %1173 = vmatpush1.bf16.msra.mxu1 %v2966_v54  ;;  %v504_v54 = vrot.slane %v3611_v42, %v503_v46 }
  0xb7   : > { %1133 = vmatprep.subr.bf16.mxu0 %v2971_v55  ;;  %1174 = vmatprep.subr.bf16.mxu1 %v2974_v56 }
  0xba   : > { %1134 = vmatpush1.bf16.msra.mxu0 %v2969_v57  ;;  %1175 = vmatpush1.bf16.msra.mxu1 %v2972_v58 }
  0xbb   : > { %1135 = vmatprep.subr.bf16.mxu0 %v2977_v59  ;;  %1176 = vmatprep.subr.bf16.mxu1 %v2980_v60 }
  0xbe   : > { %1136 = vmatpush1.bf16.msra.mxu0 %v2975_v61  ;;  %1177 = vmatpush1.bf16.msra.mxu1 %v2978_v62 }
  0xbf   : > { %1137 = vmatprep.subr.bf16.mxu0 %v2983_v63  ;;  %1178 = vmatprep.subr.bf16.mxu1 %v2986_v1  ;;  %v519_v63 = vsub.s32 4, %v3602_v38 }
  0xc1   : > { %v520_v1 = vrot.slane %v3611_v42, %v519_v63 }
  0xc2   : > { %1138 = vmatpush1.bf16.msra.mxu0 %v2981_v2  ;;  %1179 = vmatpush1.bf16.msra.mxu1 %v2984_v3  ;;  %v531_v2 = vsub.s32 7, %v3602_v38 }
  0xc3   : > { %1205 = vmatprep.subr.bf16.mxu0 %v2989_v4  ;;  %1246 = vmatprep.subr.bf16.mxu1 %v2992_v5 }
  0xc5   : > { %1156 = vmatmul.mubr.bf16.vlgmr.msra.gmra.mxu0 %v3584_v36  ;;  %1197 = vmatmul.mubr.bf16.vlgmr.msra.gmra.mxu1 %v3584_v36 }
  0xc6   : > { %1206 = vmatpush1.bf16.msra.mxu0 %v2987_v6  ;;  %1247 = vmatpush1.bf16.msra.mxu1 %v2990_v7  ;;  %v516_v6 = vrot.slane %v3611_v42, %v515_v39 }
  0xc7   : > { %1207 = vmatprep.subr.bf16.mxu0 %v2995_v8  ;;  %1248 = vmatprep.subr.bf16.mxu1 %v2998_v9 }
  0xc8   : > { %1237 = vmatprep.mubr.bf16.mxu0 %v3350_v0  ;;  %1278 = vmatprep.mubr.bf16.mxu1 %v3350_v0  ;;  %v3017_v0 = vld [vmem:[#allocation5 + $0xe0] ss:$48 sps:$4 sm:$0xff]  }
  0xca   : > { %1208 = vmatpush1.bf16.msra.mxu0 %v2993_v10  ;;  %1249 = vmatpush1.bf16.msra.mxu1 %v2996_v11  ;;  %v532_v10 = vrot.slane %v3611_v42, %v531_v2 }
  0xcb   : > { %1209 = vmatprep.subr.bf16.mxu0 %v3001_v12  ;;  %1250 = vmatprep.subr.bf16.mxu1 %v3004_v13 }
  0xce   : > { %1210 = vmatpush1.bf16.msra.mxu0 %v2999_v14  ;;  %1251 = vmatpush1.bf16.msra.mxu1 %v3002_v15  ;;  %v527_v14 = vsub.s32 6, %v3602_v38 }
  0xcf   : > { %1211 = vmatprep.subr.bf16.mxu0 %v3007_v16  ;;  %1252 = vmatprep.subr.bf16.mxu1 %v3010_v17 }
  0xd2   : > { %1212 = vmatpush1.bf16.msra.mxu0 %v3005_v18  ;;  %1253 = vmatpush1.bf16.msra.mxu1 %v3008_v19  ;;  %v528_v19 = vrot.slane %v3611_v42, %v527_v14 }
  0xd3   : > { %1213 = vmatprep.subr.bf16.mxu0 %v3013_v20  ;;  %1254 = vmatprep.subr.bf16.mxu1 %v3016_v21 }
  0xd6   : > { %1214 = vmatpush1.bf16.msra.mxu0 %v3011_v22  ;;  %1255 = vmatpush1.bf16.msra.mxu1 %v3014_v23  ;;  %v536_v23 = vrot.slane %v3605_v40, %v503_v46 }
  0xd7   : > { %1215 = vmatprep.subr.bf16.mxu0 %v3019_v24  ;;  %1256 = vmatprep.subr.bf16.mxu1 %v3022_v25  ;;  %v544_v24 = vrot.slane %v3605_v40, %v511_v41 }
  0xda   : > { %1216 = vmatpush1.bf16.msra.mxu0 %v3017_v0  ;;  %1257 = vmatpush1.bf16.msra.mxu1 %v3020_v26 }
  0xdb   : > { %1217 = vmatprep.subr.bf16.mxu0 %v3025_v27  ;;  %1258 = vmatprep.subr.bf16.mxu1 %v3028_v28  ;;  %v540_v28 = vrot.slane %v3605_v40, %v507_v43 }
  0xde   : > { %1218 = vmatpush1.bf16.msra.mxu0 %v3023_v29  ;;  %1259 = vmatpush1.bf16.msra.mxu1 %v3026_v30 }
  0xdf   : > { %1219 = vmatprep.subr.bf16.mxu0 %v3031_v31  ;;  %1260 = vmatprep.subr.bf16.mxu1 %v3034_v32 }
  0xe2   : > { %1220 = vmatpush1.bf16.msra.mxu0 %v3029_v33  ;;  %1261 = vmatpush1.bf16.msra.mxu1 %v3032_v34 }
  0xe3   : > { %2699 = vmatprep.subr.bf16.mxu0 %v3351_v35  ;;  %2705 = vmatprep.subr.bf16.mxu1 %v3351_v35 }
  0xe5   : > { %1238 = vmatmul.mubr.bf16.vlgmr.msra.gmra.mxu0 %v3584_v36  ;;  %1279 = vmatmul.mubr.bf16.vlgmr.msra.gmra.mxu1 %v3584_v36  ;;  %v3608_v36 = vrot.slane %v3605_v40, %v515_v39 }
  0xe6   : > { %2701 = vmatprep.mubr.msk.bf16.mxu0 %vm3352_vm0, %v3351_v35  ;;  %2707 = vmatprep.mubr.msk.bf16.mxu1 %vm3352_vm0, %v3351_v35 }
 0x165   : > { %v1075_v47 = vpop.f32.mrf.mxu0  ;;  %v1116_v48 = vpop.f32.mrf.mxu1 }
 0x166   : > { %v1117_v49 = vadd.f32 %v1116_v48, %v512_v44  ;;  %v1076_v61 = vadd.f32 %v1075_v47, %v504_v54 }
 0x167   : > { %v1077_v50 = vpop.f32.mrf.mxu0  ;;  %v1118_v51 = vpop.f32.mrf.mxu1 }
 0x168   : > { %v1289_v52 = vpack.c.bf16 %v1117_v49, %v1117_v49  ;;  %v1078_v53 = vadd.f32 %v1077_v50, %v508_v45  ;;  %v1287_v62 = vpack.c.bf16 %v1076_v61, %v1076_v61  ;;  %v1119_v13 = vadd.f32 %v1118_v51, %v516_v6 }
 0x169   : > { %v1120_v55 = vpop.f32.mrf.mxu1  ;;  %v1079_v56 = vpop.f32.mrf.mxu0 }
 0x16a   : > { %v1358_v57 = vsel %vm1356_vm1, %v1289_v52, 0  ;;  %v1288_v58 = vpack.c.bf16 %v1078_v53, %v1078_v53  ;;  %v1290_v18 = vpack.c.bf16 %v1119_v13, %v1119_v13 }
 0x16b   : > { %v1121_v59 = vpop.f32.mrf.mxu1  ;;  %v1080_v60 = vpop.f32.mrf.mxu0  ;;  %2706 = vmatpush3.bf16.msra.mxu1 %v1358_v57 }
 0x16c   : > { %2700 = vmatpush3.bf16.xpose.msra.mxu0 %v1288_v58  ;;  %2717 = vmatprep.subr.bf16.mxu1 %v3351_v35 }
 0x16d   : > { %2711 = vmatprep.subr.bf16.mxu0 %v3351_v35 }
 0x173   : > { %2702 = vmatmul.mubr.bf16.vlgmr.msra.gmra.mxu0 %v1287_v62 }
 0x174   : > { %2713 = vmatprep.mubr.msk.bf16.mxu0 %vm3352_vm0, %v3351_v35 }
 0x185   : > { %v1157_v3 = vpop.f32.mrf.mxu0  ;;  %v1198_v4 = vpop.f32.mrf.mxu1 }
 0x186   : > { %v1158_v5 = vadd.f32 %v1157_v3, %v520_v1  ;;  %v1199_v21 = vadd.f32 %v1198_v4, %v528_v19 }
 0x187   : > { %v1200_v7 = vpop.f32.mrf.mxu1  ;;  %v3629_v8 = vpop.f32.mrf.mxu0 }
 0x188   : > { %v1291_v9 = vpack.c.bf16 %v1158_v5, %v1158_v5  ;;  %v1201_v17 = vadd.f32 %v1200_v7, %v532_v10  ;;  %v1293_v22 = vpack.c.bf16 %v1199_v21, %v1199_v21 }
 0x189   : > { %v1202_v11 = vpop.f32.mrf.mxu1  ;;  %v1161_v12 = vpop.f32.mrf.mxu0 }
 0x18a   : > { %2712 = vmatpush3.bf16.xpose.msra.mxu0 %v1291_v9  ;;  %v1294_v20 = vpack.c.bf16 %v1201_v17, %v1201_v17 }
 0x18b   : > { %v1203_v15 = vpop.f32.mrf.mxu1  ;;  %v1162_v16 = vpop.f32.mrf.mxu0  ;;  %2723 = vmatprep.subr.bf16.mxu0 %v3351_v35 }
 0x191   : > { %2714 = vmatmul.mubr.bf16.vlgmr.msra.gmra.mxu0 %v1290_v18 }
 0x192   : > { %2724 = vmatpush3.bf16.xpose.msra.mxu0 %v1294_v20  ;;  %2725 = vmatprep.mubr.msk.bf16.mxu0 %vm3352_vm0, %v3351_v35 }
 0x193   : > { %2735 = vmatprep.subr.bf16.mxu0 %v3351_v35 }
 0x199   : > { %2726 = vmatmul.mubr.bf16.vlgmr.msra.gmra.mxu0 %v1293_v22 }
 0x19a   : > { %2737 = vmatprep.mubr.msk.bf16.mxu0 %vm3352_vm0, %v3351_v35 }
 0x1a5   : > { %v1239_v25 = vpop.f32.mrf.mxu0  ;;  %v1280_v0 = vpop.f32.mrf.mxu1 }
 0x1a6   : > { %v3642_v26 = vadd.f32 %v1239_v25, %v536_v23  ;;  %v1281_v27 = vadd.f32 %v1280_v0, %v544_v24  ;;  %v523_v25 = vsub.s32 5, %v3602_v38 }
 0x1a7   : > { %v1241_v29 = vpop.f32.mrf.mxu0  ;;  %v1282_v30 = vpop.f32.mrf.mxu1 }
 0x1a8   : > { %v1297_v31 = vpack.c.bf16 %v1281_v27, %v1281_v27  ;;  %v3648_v32 = vadd.f32 %v1282_v30, %v3608_v36  ;;  %v1242_v37 = vadd.f32 %v1241_v29, %v540_v28  ;;  %v524_v0 = vrot.slane %v3611_v42, %v523_v25 }
 0x1a9   : > { %v1243_v33 = vpop.f32.mrf.mxu0  ;;  %v1284_v34 = vpop.f32.mrf.mxu1 }
 0x1aa   : > { %2736 = vmatpush3.bf16.xpose.msra.mxu0 %v1297_v31  ;;  %v1296_v44 = vpack.c.bf16 %v1242_v37, %v1242_v37  ;;  %v1160_v27 = vadd.f32 %v3629_v8, %v524_v0  ;;  %v1295_v8 = vpack.c.bf16 %v3642_v26, %v3642_v26 }
 0x1ab   : > { %v1244_v39 = vpop.f32.mrf.mxu0  ;;  %v1285_v41 = vpop.f32.mrf.mxu1 }
 0x1ac   : > { %v1292_v29 = vpack.c.bf16 %v1160_v27, %v1160_v27  ;;  %v1558_v41 = vsel %vm1356_vm1, %v1295_v8, 0 }
 0x1ae   : > { %v1458_v33 = vsel %vm1356_vm1, %v1292_v29, 0 }
 0x1b1   : > { %2738 = vmatmul.mubr.bf16.vlgmr.msra.gmra.mxu0 %v1296_v44 }
 0x233   : > { %v1333_v45 = vpop.f32.mrf.mxu0 }
 0x234   : > { %v1339_v46 = vmul.f32 0.35355338, %v1333_v45  ;;  %v1298_v45 = vpack.c.bf16 %v3648_v32, %v3648_v32  ;;  %v3037_v32 = vld [vmem:[#allocation8 + $0x70] sm:$0xff]  }
 0x235   : > { %v2703_v47 = vpop.f32.mrf.mxu0 }
 0x236   : > { %v1341_v40 = vsel %vm1340_vm2, %v1339_v46, -inf  ;;  %v1658_v26 = vsel %vm1356_vm1, %v1298_v45, 0 }
 0x237   : > { %1342 = vmax.xlane.f32.xlu0 %v1341_v40  ;;  %v1336_v43 = vpop.f32.mrf.mxu0 }
 0x239   : > { %v2704_v48 = vpop.f32.mrf.mxu0 }
 0x251   : > { %v1435_v49 = vpop.f32.mrf.mxu0 }
 0x252   : > { %v1441_v36 = vmul.f32 0.35355338, %v1435_v49 }
 0x253   : > { %v2715_v50 = vpop.f32.mrf.mxu0 }
 0x254   : > { %v1442_v51 = vsel %vm1340_vm2, %v1441_v36, -inf  ;;  %v3036_v50 = vld [vmem:[#allocation8 + $0x38] sm:$0xff]  }
 0x255   : > { %1443 = vmax.xlane.f32.xlu0 %v1442_v51  ;;  %v1438_v52 = vpop.f32.mrf.mxu0  ;;  %v3038_v51 = vld [vmem:[#allocation8 + $0x30] sm:$0xff]  }
 0x256   : > { %v3039_v52 = vld [vmem:[#allocation8 + $0x68] sm:$0xff]  }
 0x257   : > { %v2716_v53 = vpop.f32.mrf.mxu0 }
 0x258   : > { %v3040_v53 = vld [vmem:[#allocation8 + $0x28] sm:$0xff]  }
 0x259   : > { %v1535_v54 = vpop.f32.mrf.mxu0 }
 0x25a   : > { %v1541_v55 = vmul.f32 0.35355338, %v1535_v54  ;;  %v3041_v54 = vld [vmem:[#allocation8 + $0x60] sm:$0xff]  }
 0x25b   : > { %v2727_v56 = vpop.f32.mrf.mxu0 }
 0x25c   : > { %v1542_v57 = vsel %vm1340_vm2, %v1541_v55, -inf  ;;  %v3043_v56 = vld [vmem:[#allocation8 + $0x58] sm:$0xff]  }
 0x25d   : > { %1543 = vmax.xlane.f32.xlu1 %v1542_v57  ;;  %v1538_v58 = vpop.f32.mrf.mxu0  ;;  %v3044_v57 = vld [vmem:[#allocation8 + $0x18] sm:$0xff]  }
 0x25e   : > { %v3045_v58 = vld [vmem:[#allocation8 + $0x50] sm:$0xff]  }
 0x25f   : > { %v2728_v59 = vpop.f32.mrf.mxu0 }
 0x260   : > { %v3046_v59 = vld [vmem:[#allocation8 + $0x10] sm:$0xff]  }
 0x271   : > { %v1635_v60 = vpop.f32.mrf.mxu0 }
 0x272   : > { %v1641_v61 = vmul.f32 0.35355338, %v1635_v60  ;;  %v3047_v60 = vld [vmem:[#allocation8 + $0x48] sm:$0xff]  }
 0x273   : > { %v2739_v62 = vpop.f32.mrf.mxu0 }
 0x274   : > { %v1642_v63 = vsel %vm1340_vm2, %v1641_v61, -inf  ;;  %v3049_v62 = vld [vmem:[#allocation8 + $0x40] sm:$0xff]  }
 0x275   : > { %1643 = vmax.xlane.f32.xlu1 %v1642_v63  ;;  %v1638_v1 = vpop.f32.mrf.mxu0  ;;  %v3050_v63 = vld [vmem:[#allocation8] sm:$0xff]  }
 0x276   : > { %v3051_v1 = vld [vmem:[#allocation8 + $0xf8] sm:$0xff]  }
 0x277   : > { %v2740_v2 = vpop.f32.mrf.mxu0 }
 0x278   : > { %v3052_v2 = vld [vmem:[#allocation8 + $0xb8] sm:$0xff]  }
 0x2c0   : > { %v1343_v3 = vpop.xlane.xlu0 %1342 }
 0x2c1   : > { %v1344_v4 = vsub.f32 %v1339_v46, %v1343_v3  ;;  %v3053_v3 = vld [vmem:[#allocation8 + $0xf0] sm:$0xff]  }
 0x2c3   : > { %v1345_v5 = vmul.f32 1.442695, %v1344_v4  ;;  %v3054_v4 = vld [vmem:[#allocation8 + $0xb0] sm:$0xff]  }
 0x2c5   : > { %3083 = vpow2.f32 %v1345_v5  ;;  %v3055_v5 = vld [vmem:[#allocation8 + $0xe8] sm:$0xff]  }
 0x2d2   : > { %v3084_v6 = vpop.eup %3083 }
 0x2d3   : > { %v1347_v7 = vsel %vm1340_vm2, %v3084_v6, 0.0 }
 0x2d4   : > { %1348 = vadd.xlane.f32.xlu0 %v1347_v7  ;;  %v3057_v7 = vld [vmem:[#allocation8 + $0xe0] sm:$0xff]  }
 0x2de   : > { %v1444_v9 = vpop.xlane.xlu0 %1443 }
 0x2df   : > { %v1445_v10 = vsub.f32 %v1441_v36, %v1444_v9  ;;  %v3035_v36 = vld [vmem:[#allocation8 + $0x78] sm:$0xff]   ;;  %v3058_v9 = vld [vmem:[#allocation8 + $0xa0] sm:$0xff]  }
 0x2e0   : > { %2637 = vmatprep.subr.bf16.mxu0 %v3035_v36 }
 0x2e1   : > { %v1446_v11 = vmul.f32 1.442695, %v1445_v10  ;;  %2638 = vmatpush3.bf16.msra.mxu0 %v3036_v50  ;;  %v3059_v10 = vld [vmem:[#allocation8 + $0xd8] sm:$0xff]  }
 0x2e2   : > { %2639 = vmatprep.subr.bf16.mxu0 %v3037_v32 }
 0x2e3   : > { %3085 = vpow2.f32 %v1446_v11  ;;  %v3060_v11 = vld [vmem:[#allocation8 + $0x98] sm:$0xff]  }
 0x2e5   : > { %2640 = vmatpush3.bf16.msra.mxu0 %v3038_v51  ;;  %v3103_v51 = vld [vmem:[%s3563_s3] sm:$0xff] }
 0x2e6   : > { %v1544_v12 = vpop.xlane.xlu1 %1543  ;;  %2641 = vmatprep.subr.bf16.mxu0 %v3039_v52 }
 0x2e7   : > { %v1545_v13 = vsub.f32 %v1541_v55, %v1544_v12  ;;  %v3042_v55 = vld [vmem:[#allocation8 + $0x20] sm:$0xff]   ;;  %v3061_v12 = vld [vmem:[#allocation8 + $0xd0] sm:$0xff]  }
 0x2e9   : > { %v1546_v14 = vmul.f32 1.442695, %v1545_v13  ;;  %2642 = vmatpush3.bf16.msra.mxu0 %v3040_v53  ;;  %v3062_v13 = vld [vmem:[#allocation8 + $0x90] sm:$0xff]  }
 0x2ea   : > { %2643 = vmatprep.subr.bf16.mxu0 %v3041_v54  ;;  %v3068_v54 = vld [vmem:[#allocation10 + $0x30] sm:$0xff]  }
 0x2eb   : > { %3087 = vpow2.f32 %v1546_v14  ;;  %v3063_v14 = vld [vmem:[#allocation8 + $0xc8] sm:$0xff]  }
 0x2ed   : > { %2644 = vmatpush3.bf16.msra.mxu0 %v3042_v55  ;;  %v3069_v55 = vld [vmem:[#allocation10 + $0x28] sm:$0xff]  }
 0x2ee   : > { %2645 = vmatprep.subr.bf16.mxu0 %v3043_v56  ;;  %v3070_v56 = vld [vmem:[#allocation10 + $0x20] sm:$0xff]  }
 0x2f0   : > { %v3086_v15 = vpop.eup %3085 }
 0x2f1   : > { %v1448_v16 = vsel %vm1340_vm2, %v3086_v15, 0.0  ;;  %2646 = vmatpush3.bf16.msra.mxu0 %v3044_v57  ;;  %v3071_v57 = vld [vmem:[#allocation10 + $0x18] sm:$0xff]  }
 0x2f2   : > { %1449 = vadd.xlane.f32.xlu1 %v1448_v16  ;;  %2647 = vmatprep.subr.bf16.mxu0 %v3045_v58  ;;  %v3065_v16 = vld [vmem:[#allocation8 + $0xc0] sm:$0xff]   ;;  %v3072_v58 = vld [vmem:[#allocation10 + $0x10] sm:$0xff]  }
 0x2f5   : > { %2648 = vmatpush3.bf16.msra.mxu0 %v3046_v59  ;;  %v3073_v59 = vld [vmem:[#allocation10 + $0x8] sm:$0xff]  }
 0x2f6   : > { %2649 = vmatprep.subr.bf16.mxu0 %v3047_v60  ;;  %v3074_v60 = vld [vmem:[#allocation10] sm:$0xff]  }
 0x2f8   : > { %v3088_v17 = vpop.eup %3087 }
 0x2f9   : > { %v1548_v18 = vsel %vm1340_vm2, %v3088_v17, 0.0 }
 0x2fa   : > { %1549 = vadd.xlane.f32.xlu0 %v1548_v18 }
 0x2fe   : > { %v1644_v19 = vpop.xlane.xlu1 %1643 }
 0x2ff   : > { %v1645_v20 = vsub.f32 %v1641_v61, %v1644_v19  ;;  %v3048_v61 = vld [vmem:[#allocation8 + $0x8] sm:$0xff]  }
 0x300   : > { %2650 = vmatpush3.bf16.msra.mxu0 %v3048_v61  ;;  %v3075_v61 = vld [vmem:[#allocation11 + $0x38] sm:$0xff]  }
 0x301   : > { %v1646_v21 = vmul.f32 1.442695, %v1645_v20  ;;  %2651 = vmatprep.subr.bf16.mxu0 %v3049_v62  ;;  %v3076_v62 = vld [vmem:[#allocation11 + $0x30] sm:$0xff]  }
 0x303   : > { %3089 = vpow2.f32 %v1646_v21 }
 0x304   : > { %2652 = vmatpush3.bf16.msra.mxu0 %v3050_v63  ;;  %v3077_v63 = vld [vmem:[#allocation11 + $0x28] sm:$0xff]  }
 0x305   : > { %2747 = vmatprep.subr.bf16.mxu0 %v3351_v35 }
 0x310   : > { %v3090_v22 = vpop.eup %3089 }
 0x311   : > { %v1648_v23 = vsel %vm1340_vm2, %v3090_v22, 0.0 }
 0x312   : > { %1649 = vadd.xlane.f32.xlu1 %v1648_v23 }
 0x35d   : > { %v1349_v24 = vpop.xlane.xlu0 %1348 }
 0x35e   : > { %3091 = vrcp.f32 %v1349_v24 }
 0x36b   : > { %v3092_v28 = vpop.eup %3091 }
 0x36c   : > { %v1351_v30 = vmul.f32 %v3092_v28, %v3084_v6  ;;  %v3056_v6 = vld [vmem:[#allocation8 + $0xa8] sm:$0xff]  }
 0x36e   : > { %v1352_v31 = vpack.c.bf16 %v1351_v30, %v1351_v30 }
 0x370   : > { %2708 = vmatmul.mubr.msk.bf16.vlgmr.msra.gmra.mxu1 %vm1340_vm2, %v1352_v31 }
 0x371   : > { %2718 = vmatpush3.bf16.msra.mxu1 %v1458_v33  ;;  %2719 = vmatprep.mubr.msk.bf16.mxu1 %vm3352_vm0, %v3351_v35 }
 0x372   : > { %2729 = vmatprep.subr.bf16.mxu1 %v3351_v35 }
 0x37b   : > { %v1450_v34 = vpop.xlane.xlu1 %1449 }
 0x37c   : > { %3093 = vrcp.f32 %v1450_v34 }
 0x383   : > { %v1550_v38 = vpop.xlane.xlu0 %1549 }
 0x384   : > { %3095 = vrcp.f32 %v1550_v38 }
 0x389   : > { %v3094_v42 = vpop.eup %3093 }
 0x38a   : > { %v1452_v37 = vmul.f32 %v3094_v42, %v3086_v15  ;;  %v3064_v15 = vld [vmem:[#allocation8 + $0x88] sm:$0xff]  }
 0x38c   : > { %v1453_v39 = vpack.c.bf16 %v1452_v37, %v1452_v37 }
 0x38e   : > { %2720 = vmatmul.mubr.msk.bf16.vlgmr.msra.gmra.mxu1 %vm1340_vm2, %v1453_v39  ;;  %v3067_v39 = vld [vmem:[#allocation10 + $0x38] sm:$0xff]  }
 0x38f   : > { %2730 = vmatpush3.bf16.msra.mxu1 %v1558_v41  ;;  %2731 = vmatprep.mubr.msk.bf16.mxu1 %vm3352_vm0, %v3351_v35 }
 0x390   : > { %2741 = vmatprep.subr.bf16.mxu1 %v3351_v35 }
 0x391   : > { %v3096_v44 = vpop.eup %3095 }
 0x392   : > { %v1552_v46 = vmul.f32 %v3096_v44, %v3088_v17  ;;  %v3066_v17 = vld [vmem:[#allocation8 + $0x80] sm:$0xff]  }
 0x394   : > { %v1553_v47 = vpack.c.bf16 %v1552_v46, %v1552_v46 }
 0x396   : > { %2732 = vmatmul.mubr.msk.bf16.vlgmr.msra.gmra.mxu1 %vm1340_vm2, %v1553_v47 }
 0x397   : > { %2742 = vmatpush3.bf16.msra.mxu1 %v1658_v26  ;;  %2743 = vmatprep.mubr.msk.bf16.mxu1 %vm3352_vm0, %v3351_v35  ;;  %v2562_v26 = vld [vmem:[%s3766_s7] ss:$0 sm:$0xff] }
 0x398   : > { %2659 = vmatprep.subr.bf16.mxu1 %v3051_v1  ;;  %v3078_v1 = vld [vmem:[#allocation11 + $0x20] sm:$0xff]  }
 0x39b   : > { %v1650_v40 = vpop.xlane.xlu1 %1649 }
 0x39c   : > { %3097 = vrcp.f32 %v1650_v40 }
 0x3a9   : > { %v3098_v43 = vpop.eup %3097 }
 0x3aa   : > { %v1652_v48 = vmul.f32 %v3098_v43, %v3090_v22 }
 0x3ac   : > { %v1653_v49 = vpack.c.bf16 %v1652_v48, %v1652_v48 }
 0x3ae   : > { %2744 = vmatmul.mubr.msk.bf16.vlgmr.msra.gmra.mxu1 %vm1340_vm2, %v1653_v49 }
 0x3af   : > { %2660 = vmatpush3.bf16.msra.mxu1 %v3052_v2  ;;  %v3079_v2 = vld [vmem:[#allocation11 + $0x18] sm:$0xff]  }
 0x3b0   : > { %2661 = vmatprep.subr.bf16.mxu1 %v3053_v3  ;;  %v3080_v3 = vld [vmem:[#allocation11 + $0x10] sm:$0xff]  }
 0x3b3   : > { %2662 = vmatpush3.bf16.msra.mxu1 %v3054_v4 }
 0x3b4   : > { %2663 = vmatprep.subr.bf16.mxu1 %v3055_v5 }
 0x3b7   : > { %2664 = vmatpush3.bf16.msra.mxu1 %v3056_v6 }
 0x3b8   : > { %2665 = vmatprep.subr.bf16.mxu1 %v3057_v7 }
 0x3bb   : > { %2666 = vmatpush3.bf16.msra.mxu1 %v3058_v9 }
 0x3bc   : > { %2667 = vmatprep.subr.bf16.mxu1 %v3059_v10 }
 0x3bf   : > { %2668 = vmatpush3.bf16.msra.mxu1 %v3060_v11 }
 0x3c0   : > { %2669 = vmatprep.subr.bf16.mxu1 %v3061_v12 }
 0x3c3   : > { %2670 = vmatpush3.bf16.msra.mxu1 %v3062_v13 }
 0x3c4   : > { %2671 = vmatprep.subr.bf16.mxu1 %v3063_v14  ;;  %v2595_v14 = vld [vmem:[%s3766_s7 + $0x1] ss:$0 sm:$0xff] }
 0x3c7   : > { %2672 = vmatpush3.bf16.msra.mxu1 %v3064_v15 }
 0x3c8   : > { %2673 = vmatprep.subr.bf16.mxu1 %v3065_v16  ;;  %v2596_v16 = vld [vmem:[%s3766_s7 + $0x2] ss:$0 sm:$0xff] }
 0x3cb   : > { %2674 = vmatpush3.bf16.msra.mxu1 %v3066_v17 }
 0x3cc   : > { %2767 = vmatprep.subr.bf16.mxu1 %v3351_v35 }
 0x430   : > { %v1394_v18 = vpop.f32.mrf.mxu1 }
 0x431   : > { %v1400_v24 = vpack.c.bf16 %v1394_v18, %v1394_v18 }
 0x432   : > { %v2709_v19 = vpop.f32.mrf.mxu1 }
 0x434   : > { %v1397_v20 = vpop.f32.mrf.mxu1 }
 0x435   : > { %v3081_v20 = vld [vmem:[#allocation11 + $0x8] sm:$0xff]  }
 0x436   : > { %v2710_v21 = vpop.f32.mrf.mxu1 }
 0x437   : > { %v3082_v21 = vld [vmem:[#allocation11] sm:$0xff]  }
 0x44e   : > { %v1494_v22 = vpop.f32.mrf.mxu1 }
 0x44f   : > { %v1500_v23 = vpack.c.bf16 %v1494_v22, %v1494_v22  ;;  %v2597_v22 = vld [vmem:[%s3764_s5] ss:$0 sm:$0xff] }
 0x450   : > { %v2721_v25 = vpop.f32.mrf.mxu1 }
 0x451   : > { %1993 = vmatprep.mubr.bf16.mxu0 %v1500_v23 }
 0x452   : > { %v1497_v0 = vpop.f32.mrf.mxu1  ;;  %1994 = vmatmul.mubr.bf16.vlgmr.msra.gmra.mxu0 %v1400_v24 }
 0x453   : > { %2763 = vmatprep.mubr.msk.bf16.mxu0 %vm3352_vm0, %v3351_v35  ;;  %2748 = vmatpush3.bf16.msra.mxu0 %v3067_v39 }
 0x454   : > { %v2722_v27 = vpop.f32.mrf.mxu1  ;;  %2749 = vmatprep.subr.bf16.mxu0 %v3351_v35 }
 0x456   : > { %v1594_v28 = vpop.f32.mrf.mxu1 }
 0x457   : > { %v1600_v38 = vpack.c.bf16 %v1594_v28, %v1594_v28  ;;  %2750 = vmatpush3.bf16.msra.mxu0 %v3068_v54 }
 0x458   : > { %v2733_v29 = vpop.f32.mrf.mxu1  ;;  %2751 = vmatprep.subr.bf16.mxu0 %v3351_v35 }
 0x45a   : > { %v1597_v30 = vpop.f32.mrf.mxu1 }
 0x45b   : > { %2752 = vmatpush3.bf16.msra.mxu0 %v3069_v55  ;;  %v2606_v30 = vld [vmem:[%s3766_s7 + $0x3] ss:$0 sm:$0xff] }
 0x45c   : > { %v2734_v31 = vpop.f32.mrf.mxu1  ;;  %2753 = vmatprep.subr.bf16.mxu0 %v3351_v35 }
 0x45f   : > { %2754 = vmatpush3.bf16.msra.mxu0 %v3070_v56 }
 0x460   : > { %2755 = vmatprep.subr.bf16.mxu0 %v3351_v35 }
 0x463   : > { %2756 = vmatpush3.bf16.msra.mxu0 %v3071_v57 }
 0x464   : > { %2757 = vmatprep.subr.bf16.mxu0 %v3351_v35 }
 0x467   : > { %2758 = vmatpush3.bf16.msra.mxu0 %v3072_v58 }
 0x468   : > { %2759 = vmatprep.subr.bf16.mxu0 %v3351_v35 }
 0x46b   : > { %2760 = vmatpush3.bf16.msra.mxu0 %v3073_v59 }
 0x46c   : > { %2761 = vmatprep.subr.bf16.mxu0 %v3351_v35 }
 0x46e   : > { %v1694_v33 = vpop.f32.mrf.mxu1 }
 0x46f   : > { %v1700_v34 = vpack.c.bf16 %v1694_v33, %v1694_v33  ;;  %2762 = vmatpush3.bf16.msra.mxu0 %v3074_v60 }
 0x470   : > { %v2745_v42 = vpop.f32.mrf.mxu1 }
 0x471   : > { %2033 = vmatprep.mubr.bf16.mxu1 %v1700_v34 }
 0x472   : > { %v1697_v8 = vpop.f32.mrf.mxu1  ;;  %2034 = vmatmul.mubr.bf16.vlgmr.msra.gmra.mxu1 %v1600_v38 }
 0x473   : > { %2783 = vmatprep.mubr.msk.bf16.mxu1 %vm3352_vm0, %v3351_v35  ;;  %2768 = vmatpush3.bf16.msra.mxu1 %v3075_v61 }
 0x474   : > { %v2746_v37 = vpop.f32.mrf.mxu1  ;;  %2769 = vmatprep.subr.bf16.mxu1 %v3351_v35 }
 0x477   : > { %2770 = vmatpush3.bf16.msra.mxu1 %v3076_v62 }
 0x478   : > { %2771 = vmatprep.subr.bf16.mxu1 %v3351_v35 }
 0x47b   : > { %2772 = vmatpush3.bf16.msra.mxu1 %v3077_v63 }
 0x47c   : > { %2773 = vmatprep.subr.bf16.mxu1 %v3351_v35 }
 0x47f   : > { %2774 = vmatpush3.bf16.msra.mxu1 %v3078_v1 }
 0x480   : > { %2775 = vmatprep.subr.bf16.mxu1 %v3351_v35 }
 0x483   : > { %2776 = vmatpush3.bf16.msra.mxu1 %v3079_v2 }
 0x484   : > { %2777 = vmatprep.subr.bf16.mxu1 %v3351_v35 }
 0x487   : > { %2778 = vmatpush3.bf16.msra.mxu1 %v3080_v3 }
 0x488   : > { %2779 = vmatprep.subr.bf16.mxu1 %v3351_v35 }
 0x48b   : > { %2780 = vmatpush3.bf16.msra.mxu1 %v3081_v20 }
 0x48c   : > { %2781 = vmatprep.subr.bf16.mxu1 %v3351_v35 }
 0x48f   : > { %2782 = vmatpush3.bf16.msra.mxu1 %v3082_v21 }
 0x512   : > { %v2653_v41 = vpop.f32.mrf.mxu0 }
 0x514   : > { %v2654_v44 = vpop.f32.mrf.mxu0 }
 0x515   : > { %v2655_v47 = vadd.f32 %v2654_v44, %v2653_v41 }
 0x516   : > { %v2656_v45 = vpop.f32.mrf.mxu0 }
 0x517   : > { %v1996_v48 = vadd.f32 %v2655_v47, %v2562_v26 }
 0x518   : > { %v2657_v46 = vpop.f32.mrf.mxu0 }
 0x532   : > { %v2675_v40 = vpop.f32.mrf.mxu1 }
 0x534   : > { %v2676_v43 = vpop.f32.mrf.mxu1 }
 0x535   : > { %v2677_v49 = vadd.f32 %v2676_v43, %v2675_v40  ;;  %v2615_v43 = vld [vmem:[%s3766_s7 + $0x4] ss:$0 sm:$0xff] }
 0x536   : > { %v2678_v36 = vpop.f32.mrf.mxu1 }
 0x537   : > { %v2036_v50 = vadd.f32 %v2677_v49, %v1996_v48  ;;  %v2616_v49 = vld [vmem:[%s3766_s7 + $0x5] ss:$0 sm:$0xff] }
 0x538   : > { %v2679_v32 = vpop.f32.mrf.mxu1 }
 0x539   : > { %v2041_v52 = vadd.f32 %v3103_v51, %v2036_v50 }
 0x53b   : > { %2042 = vadd.xlane.f32.xlu0 %v2041_v52  ;;  %v2045_v53 = vmul.f32 %v2041_v52, %v2041_v52 }
 0x53d   : > { %2046 = vadd.xlane.f32.xlu1 %v2045_v53 }
 0x5c4   : > { %v2043_v4 = vpop.xlane.xlu0 %2042 }
 0x5c5   : > { %v2044_v5 = vmul.f32 0.03125, %v2043_v4 }
 0x5c6   : > { %v2047_v6 = vpop.xlane.xlu1 %2046 }
 0x5c7   : > { %v2049_v7 = vmul.f32 %v2044_v5, %v2044_v5  ;;  %v2048_v9 = vmul.f32 0.03125, %v2047_v6  ;;  %v2051_v12 = vsub.f32 %v2041_v52, %v2044_v5 }
 0x5c9   : > { %v2050_v10 = vsub.f32 %v2048_v9, %v2049_v7 }
 0x5cb   : > { %v2052_v11 = vadd.f32 1e-06, %v2050_v10 }
 0x5cd   : > { %3099 = vrsqrt.f32 %v2052_v11 }
 0x5da   : > { %v3100_v13 = vpop.eup %3099 }
 0x5db   : > { %v2054_v15 = vmul.f32 %v3100_v13, %v2051_v12 }
 0x5dd   : > { %v2059_v17 = vmul.f32 %v2595_v14, %v2054_v15 }
 0x5df   : > { %v2064_v18 = vadd.f32 %v2596_v16, %v2059_v17 }
 0x5e1   : > { %v2065_v19 = vpack.c.bf16 %v2064_v18, %v2064_v18 }
 0x5e3   : > { %2764 = vmatmul.mubr.bf16.vlgmr.msra.gmra.mxu0 %v2065_v19 }
 0x6a3   : > { %v2171_v23 = vpop.f32.mrf.mxu0 }
 0x6a4   : > { %v2172_v24 = vadd.f32 %v2597_v22, %v2171_v23 }
 0x6a5   : > { %v2765_v25 = vpop.f32.mrf.mxu0 }
 0x6a6   : > { %v2177_v0 = vmax.f32 %v2172_v24, 0.0 }
 0x6a7   : > { %v2174_v27 = vpop.f32.mrf.mxu0 }
 0x6a8   : > { %v2178_v28 = vpack.c.bf16 %v2177_v0, %v2177_v0 }
 0x6a9   : > { %v2766_v29 = vpop.f32.mrf.mxu0 }
 0x6aa   : > { %2784 = vmatmul.mubr.bf16.vlgmr.msra.gmra.mxu1 %v2178_v28 }
 0x76a   : > { %v2281_v31 = vpop.f32.mrf.mxu1 }
 0x76b   : > { %v2282_v35 = vadd.f32 %v2606_v30, %v2281_v31 }
 0x76c   : > { %v2785_v33 = vpop.f32.mrf.mxu1 }
 0x76d   : > { %v2287_v34 = vadd.f32 %v2282_v35, %v2064_v18 }
 0x76e   : > { %v2284_v38 = vpop.f32.mrf.mxu1 }
 0x76f   : > { %2288 = vadd.xlane.f32.xlu0 %v2287_v34  ;;  %v2291_v42 = vmul.f32 %v2287_v34, %v2287_v34 }
 0x770   : > { %v2786_v8 = vpop.f32.mrf.mxu1 }
 0x771   : > { %2292 = vadd.xlane.f32.xlu1 %v2291_v42 }
 0x7f8   : > { %v2289_v37 = vpop.xlane.xlu0 %2288 }
 0x7f9   : > { %v2290_v39 = vmul.f32 0.03125, %v2289_v37 }
 0x7fa   : > { %v2293_v41 = vpop.xlane.xlu1 %2292 }
 0x7fb   : > { %v2295_v44 = vmul.f32 %v2290_v39, %v2290_v39  ;;  %v2294_v45 = vmul.f32 0.03125, %v2293_v41  ;;  %v2297_v26 = vsub.f32 %v2287_v34, %v2290_v39 }
 0x7fd   : > { %v2296_v46 = vsub.f32 %v2294_v45, %v2295_v44 }
 0x7ff   : > { %v2298_v47 = vadd.f32 1e-06, %v2296_v46 }
 0x801   : > { %3101 = vrsqrt.f32 %v2298_v47 }
 0x80e   : > { %v3102_v40 = vpop.eup %3101 }
 0x80f   : > { %v2300_v48 = vmul.f32 %v3102_v40, %v2297_v26 }
 0x811   : > { %v2305_v36 = vmul.f32 %v2615_v43, %v2300_v48 }
 0x813   : > { %v2310_v50 = vadd.f32 %v2616_v49, %v2305_v36 }
 0x815   : > { %2311 = vst [vmem:[%s391_s14] sm:$0xff] %v2310_v50 }
 0x816   : > { %3275 = shalt.err (!%p3272_p1)
}
 0x817   : > { %s3276_s19 = scalar_lea.hbm %s2324_s16, 128  ;;  %s3280_s26 = scalar_lea.hbm %s3767_s8, 256 }
 0x818   : > { %p3277_p3 = scmp.ne.s32.totalorder %s2324_s16, %s3276_s19  ;;  %p3281_p6 = scmp.lt.s32.totalorder %s2324_s16, %s3767_s8 }
 0x819   : > { %p3282_p2 = scmp.lt.s32.totalorder %s3280_s26, %s3276_s19 }
 0x81a   : > { %p3278_p4 = pnand %p3277_p3, %p3793_p11 }
 0x81b   : > { %p3283_p7 = por %p3282_p2, %p3281_p6 }
 0x81c   : > { %p3279_p12 = pneg %p3278_p4 }
 0x81e   : > { %p3284_p8 = pnand %p3283_p7, %p3279_p12 }
 0x820   : > { %3287 = shalt.err (!%p3284_p8)
}
 0x821   : > { %2809 = dma.vmem_to_hbm [thread:$0]  (%p3793_p11), %s2327_s9, 128, %s2324_s16, %s2313_s23  }
 0x822 PF: > { %s2338_s12 = sand.u32 1, %s3326_s27   ;;  %p3794_p0 = scmp.ne.s32.totalorder %s3783_s21, 0 }
 0x823   : > { %p3795_p13 = scmp.ge.s32.totalorder %s3338_s30, 2  ;;  %s2339_s14 = scalar_lea.sflag [#allocation4], %s2338_s12 }
 0x825   : > { %p2832_p5 = pnand %p3795_p13, %p3794_p0 }
 0x827   : > { %p2833_p9 = pneg %p2832_p5 }
 0x829   : > { %3321 = dma.done.wait (%p2833_p9), %s2339_s14, 128  }
 0x82a   : > { %3323 = vsyncadd (%p2833_p9), %s2339_s14, 4294967168  ;;  %p24_p10 = scmp.ge.s32.totalorder %s3500_s18, 4   ;;  %s3796_s27 = smov %s3330_s28 }
 0x82b   : > { %s3797_s28 = smov %s3334_s29  ;;  %s3798_s29 = smov %s3512_s20 }
 0x82c   : > { %s3799_s30 = smov %s3500_s18  ;;  %26 = sbr.rel (!%p24_p10) target bundleno = 12 (0xc), region = 117 }
 0x831   :  { %2344 = vsyncpa [#allocation3], 1 }
 0x832   :  { %2346 = vsyncpa [#allocation3 + $0x1], 1 }
 0x833   :  { %2347 = vsyncpa [#allocation6], 1 }
 0x834   :  { %2348 = vsyncpa [#allocation9], 1 }
 0x835   :  { %2349 = vsyncpa [#allocation12], 1 }
 0x836   :  { %2350 = vsyncpa [#allocation4], 1 }
 0x837   :  { %2352 = vsyncpa [#allocation4 + $0x1], 1 }

</bundles_post_ra>
